<compile_context>
chip_gen: v6e
topology: v6e:2x2x1
jax: 0.10.0
libtpu: 0.0.40
codegen_flags: <defaults>
</compile_context>

<pallas_src>
import functools

import jax
import jax.numpy as jnp
from jax import lax
from jax.experimental import pallas as pl
from jax.experimental.pallas import tpu as pltpu


def _round_up(x, m):
    return ((x + m - 1) // m) * m


def _cdiv(a, b):
    return -(-a // b)


def _conv_relu_kernel(x_ref, w_ref, b_ref, o_ref, *, KH, KW, stride, th, W_out):
    """One grid step = one halo'd row-block of one image.

    x_ref: (1, bh, W_padded, Cin_pad)   bf16 halo'd input rows (bh = (th-1)*s + KH)
    w_ref: (KH*KW, Cin_pad, Cout_pad)   bf16 per-tap weights
    b_ref: (1, Cout_pad)                f32 bias
    o_ref: (1, th*W_out, Cout_pad)      f32 output rows (lane-dense Cout)
    """
    xb = x_ref[0]                       # (bh, W_padded, Cin_pad), bf16
    cin_pad = xb.shape[-1]
    cout_pad = o_ref.shape[-1]
    rows = th * W_out

    acc = jnp.zeros((rows, cout_pad), jnp.float32)
    # KH*KW taps: shifted views of the VMEM block, accumulated in f32 on MXU.
    for kh in range(KH):
        for kw in range(KW):
            xs = lax.slice(
                xb,
                (kh, kw, 0),
                (kh + (th - 1) * stride + 1,
                 kw + (W_out - 1) * stride + 1,
                 cin_pad),
                (stride, stride, 1),
            )                            # (th, W_out, Cin_pad)
            xs = xs.reshape(rows, cin_pad)
            acc = acc + jnp.dot(
                xs, w_ref[kh * KW + kw], preferred_element_type=jnp.float32
            )

    acc = acc + b_ref[...]               # f32 bias
    o_ref[0] = jnp.maximum(acc, 0.0).astype(o_ref.dtype)


def conv_block_forward(x_nchw, weight, bias, *, padding=0, stride=1,
                       target_rows=1024):
    """ReLU(Conv2d(x))  —  matches nn.Conv2d(stride, padding) + nn.ReLU.

    x_nchw : (N, Cin, H, W)
    weight : (Cout, Cin, KH, KW)   (PyTorch layout)
    bias   : (Cout,)
    returns: (N, Cout, H_out, W_out)  float32
    """
    N, Cin, H, W = x_nchw.shape
    Cout, _, KH, KW = weight.shape
    H_out = (H + 2 * padding - KH) // stride + 1
    W_out = (W + 2 * padding - KW) // stride + 1
    assert H_out > 0 and W_out > 0

    Cin_pad = _round_up(Cin, 8)          # dense contraction sublanes
    Cout_pad = _round_up(Cout, 128)      # lane-dense output

    # --- row tiling over H_out: big tiles, but keep >=2 grid steps for v7x ---
    th = max(1, min(H_out, max(1, target_rows // max(1, W_out))))
    if N * _cdiv(H_out, th) < 2 and H_out >= 2:
        th = _cdiv(H_out, 2)
    n_h = _cdiv(H_out, th)
    rows = th * W_out
    bh = (th - 1) * stride + KH          # halo'd input rows per block
    n_blocks = N * n_h
    W_padded = W + 2 * padding

    # --- glue (plain JAX): NCHW->NHWC, bf16, spatial + channel zero-pad ------
    x = jnp.transpose(x_nchw, (0, 2, 3, 1)).astype(jnp.bfloat16)
    H_need = (n_h * th - 1) * stride + KH
    pad_h_hi = max(padding, H_need - H - padding)
    x = jnp.pad(x, ((0, 0), (padding, pad_h_hi), (padding, padding),
                    (0, Cin_pad - Cin)))

    # halo'd row blocks: (N*n_h, bh, W_padded, Cin_pad); no duplication if n_h==1
    if n_h == 1:
        xb = x[:, :bh][:, None]
    else:
        xb = jnp.stack(
            [x[:, t * th * stride: t * th * stride + bh] for t in range(n_h)],
            axis=1)
    xb = xb.reshape(n_blocks, bh, W_padded, Cin_pad)

    # weights -> (KH*KW, Cin_pad, Cout_pad) bf16; bias -> (1, Cout_pad) f32
    w = jnp.transpose(weight, (2, 3, 1, 0))                     # (KH,KW,Cin,Cout)
    w = jnp.pad(w, ((0, 0), (0, 0), (0, Cin_pad - Cin), (0, Cout_pad - Cout)))
    w = w.reshape(KH * KW, Cin_pad, Cout_pad).astype(jnp.bfloat16)
    b2 = jnp.pad(bias.astype(jnp.float32), (0, Cout_pad - Cout)).reshape(1, Cout_pad)

    kernel = functools.partial(_conv_relu_kernel, KH=KH, KW=KW, stride=stride,
                               th=th, W_out=W_out)

    bytes_accessed = (n_blocks * bh * W_padded * Cin_pad * 2
                      + KH * KW * Cin_pad * Cout_pad * 2
                      + Cout_pad * 4
                      + n_blocks * rows * Cout_pad * 4)
    flops = 2 * n_blocks * rows * (KH * KW * Cin_pad) * Cout_pad

    out = pl.pallas_call(
        kernel,
        out_shape=jax.ShapeDtypeStruct((n_blocks, rows, Cout_pad), jnp.float32),
        grid_spec=pltpu.PrefetchScalarGridSpec(
            num_scalar_prefetch=0,
            grid=(n_blocks,),
            in_specs=[
                # per-step halo'd activation block
                pl.BlockSpec((1, bh, W_padded, Cin_pad), lambda i: (i, 0, 0, 0)),
                # constant-index weights (resident for the whole call)
                pl.BlockSpec((KH * KW, Cin_pad, Cout_pad), lambda i: (0, 0, 0)),
                # constant-index bias
                pl.BlockSpec((1, Cout_pad), lambda i: (0, 0)),
            ],
            out_specs=pl.BlockSpec((1, rows, Cout_pad), lambda i: (i, 0, 0)),
        ),
        compiler_params=pltpu.CompilerParams(
            dimension_semantics=("parallel",),
            vmem_limit_bytes=48 * 1024 * 1024,
        ),
        cost_estimate=pl.CostEstimate(
            flops=flops, transcendentals=0, bytes_accessed=bytes_accessed),
    )(xb, w, b2)

    # --- glue: drop row / lane padding, back to NCHW -------------------------
    out = out.reshape(N, n_h, th, W_out, Cout_pad)[..., :Cout]
    out = out.reshape(N, n_h * th, W_out, Cout)[:, :H_out]
    return jnp.transpose(out, (0, 3, 1, 2))


if __name__ == "__main__":
    # ConvBlock(in_channels=4, out_channels=8, kernel_size=3, padding=1)
    N, Cin, H, W = 2, 4, 16, 16
    Cout, KH, KW = 8, 3, 3
    padding = 1

    key = jax.random.PRNGKey(0)
    kx, kw, kb = jax.random.split(key, 3)
    x = jax.random.normal(kx, (N, Cin, H, W), dtype=jnp.float32)
    fan_in = Cin * KH * KW
    weight = jax.random.normal(kw, (Cout, Cin, KH, KW), dtype=jnp.float32) * (
        2.0 / fan_in) ** 0.5
    bias = jax.random.normal(kb, (Cout,), dtype=jnp.float32) * 0.01

    out = conv_block_forward(x, weight, bias, padding=padding)
    out = jax.block_until_ready(out)

    # reference: XLA conv (same bf16 inputs, f32 accumulation) + bias + relu
    ref = lax.conv_general_dilated(
        x.astype(jnp.bfloat16), weight.astype(jnp.bfloat16),
        window_strides=(1, 1), padding=[(padding, padding)] * 2,
        dimension_numbers=("NCHW", "OIHW", "NCHW"),
        preferred_element_type=jnp.float32,
    ) + bias.reshape(1, Cout, 1, 1)
    ref = jnp.maximum(ref, 0.0)

    assert out.shape == (N, Cout, H, W)
    assert jnp.allclose(out, ref, atol=1e-2, rtol=1e-2)
    print("KERNEL_OK")
</pallas_src>

<mosaic_0001>
module attributes {stable_mosaic.version = 11 : i64} {
  func.func @_conv_relu_kernel(%arg0: i32, %arg1: memref<1x18x18x8xbf16, #tpu.memory_space<vmem>>, %arg2: memref<9x8x128xbf16, #tpu.memory_space<vmem>>, %arg3: memref<1x128xf32, #tpu.memory_space<vmem>>, %arg4: memref<1x256x128xf32, #tpu.memory_space<vmem>>) attributes {dimension_semantics = [#tpu.dimension_semantics<parallel>], iteration_bounds = array<i64: 2>, scalar_prefetch = 0 : i64, scratch_operands = 0 : i64, tpu.core_type = #tpu.core_type<tc>, window_params = [{transform_indices = @transform_0, window_bounds = array<i64: 1, 18, 18, 8>}, {pipeline_mode = #tpu.pipeline_mode<synchronous>, transform_indices = @transform_1, window_bounds = array<i64: 9, 8, 128>}, {pipeline_mode = #tpu.pipeline_mode<synchronous>, transform_indices = @transform_2, window_bounds = array<i64: 1, 128>}, {transform_indices = @transform_3, window_bounds = array<i64: 1, 256, 128>}]} {
    %c0 = arith.constant 0 : index
    %c0_0 = arith.constant 0 : index
    %c0_1 = arith.constant 0 : index
    %c0_2 = arith.constant 0 : index
    %0 = vector.load %arg1[%c0, %c0_0, %c0_1, %c0_2] : memref<1x18x18x8xbf16, #tpu.memory_space<vmem>>, vector<1x18x18x8xbf16>
    %1 = vector.shape_cast %0 : vector<1x18x18x8xbf16> to vector<18x18x8xbf16>
    %cst = arith.constant 0.000000e+00 : f32
    %2 = vector.broadcast %cst : f32 to vector<256x128xf32>
    %3 = vector.extract_strided_slice %1 {offsets = [0, 0, 0], sizes = [16, 16, 8], strides = [1, 1, 1]} : vector<18x18x8xbf16> to vector<16x16x8xbf16>
    %4 = vector.shape_cast %3 : vector<16x16x8xbf16> to vector<256x8xbf16>
    %c0_3 = arith.constant 0 : index
    %c0_4 = arith.constant 0 : index
    %c0_5 = arith.constant 0 : index
    %5 = vector.load %arg2[%c0_3, %c0_4, %c0_5] : memref<9x8x128xbf16, #tpu.memory_space<vmem>>, vector<1x8x128xbf16>
    %6 = vector.shape_cast %5 : vector<1x8x128xbf16> to vector<8x128xbf16>
    %cst_6 = arith.constant dense<0.000000e+00> : vector<256x128xf32>
    %7 = tpu.matmul %4, %6, %cst_6 {dimension_numbers = #tpu.dot_dimension_numbers<[1], [0], [0], [1], [0, 0, 1, 1], [], []>} : vector<256x8xbf16>, vector<8x128xbf16>, vector<256x128xf32> -> vector<256x128xf32>
    %8 = arith.addf %2, %7 : vector<256x128xf32>
    %9 = vector.extract_strided_slice %1 {offsets = [0, 1, 0], sizes = [16, 16, 8], strides = [1, 1, 1]} : vector<18x18x8xbf16> to vector<16x16x8xbf16>
    %10 = vector.shape_cast %9 : vector<16x16x8xbf16> to vector<256x8xbf16>
    %c1 = arith.constant 1 : index
    %c0_7 = arith.constant 0 : index
    %c0_8 = arith.constant 0 : index
    %11 = vector.load %arg2[%c1, %c0_7, %c0_8] : memref<9x8x128xbf16, #tpu.memory_space<vmem>>, vector<1x8x128xbf16>
    %12 = vector.shape_cast %11 : vector<1x8x128xbf16> to vector<8x128xbf16>
    %cst_9 = arith.constant dense<0.000000e+00> : vector<256x128xf32>
    %13 = tpu.matmul %10, %12, %cst_9 {dimension_numbers = #tpu.dot_dimension_numbers<[1], [0], [0], [1], [0, 0, 1, 1], [], []>} : vector<256x8xbf16>, vector<8x128xbf16>, vector<256x128xf32> -> vector<256x128xf32>
    %14 = arith.addf %8, %13 : vector<256x128xf32>
    %15 = vector.extract_strided_slice %1 {offsets = [0, 2, 0], sizes = [16, 16, 8], strides = [1, 1, 1]} : vector<18x18x8xbf16> to vector<16x16x8xbf16>
    %16 = vector.shape_cast %15 : vector<16x16x8xbf16> to vector<256x8xbf16>
    %c2 = arith.constant 2 : index
    %c0_10 = arith.constant 0 : index
    %c0_11 = arith.constant 0 : index
    %17 = vector.load %arg2[%c2, %c0_10, %c0_11] : memref<9x8x128xbf16, #tpu.memory_space<vmem>>, vector<1x8x128xbf16>
    %18 = vector.shape_cast %17 : vector<1x8x128xbf16> to vector<8x128xbf16>
    %cst_12 = arith.constant dense<0.000000e+00> : vector<256x128xf32>
    %19 = tpu.matmul %16, %18, %cst_12 {dimension_numbers = #tpu.dot_dimension_numbers<[1], [0], [0], [1], [0, 0, 1, 1], [], []>} : vector<256x8xbf16>, vector<8x128xbf16>, vector<256x128xf32> -> vector<256x128xf32>
    %20 = arith.addf %14, %19 : vector<256x128xf32>
    %21 = vector.extract_strided_slice %1 {offsets = [1, 0, 0], sizes = [16, 16, 8], strides = [1, 1, 1]} : vector<18x18x8xbf16> to vector<16x16x8xbf16>
    %22 = vector.shape_cast %21 : vector<16x16x8xbf16> to vector<256x8xbf16>
    %c3 = arith.constant 3 : index
    %c0_13 = arith.constant 0 : index
    %c0_14 = arith.constant 0 : index
    %23 = vector.load %arg2[%c3, %c0_13, %c0_14] : memref<9x8x128xbf16, #tpu.memory_space<vmem>>, vector<1x8x128xbf16>
    %24 = vector.shape_cast %23 : vector<1x8x128xbf16> to vector<8x128xbf16>
    %cst_15 = arith.constant dense<0.000000e+00> : vector<256x128xf32>
    %25 = tpu.matmul %22, %24, %cst_15 {dimension_numbers = #tpu.dot_dimension_numbers<[1], [0], [0], [1], [0, 0, 1, 1], [], []>} : vector<256x8xbf16>, vector<8x128xbf16>, vector<256x128xf32> -> vector<256x128xf32>
    %26 = arith.addf %20, %25 : vector<256x128xf32>
    %27 = vector.extract_strided_slice %1 {offsets = [1, 1, 0], sizes = [16, 16, 8], strides = [1, 1, 1]} : vector<18x18x8xbf16> to vector<16x16x8xbf16>
    %28 = vector.shape_cast %27 : vector<16x16x8xbf16> to vector<256x8xbf16>
    %c4 = arith.constant 4 : index
    %c0_16 = arith.constant 0 : index
    %c0_17 = arith.constant 0 : index
    %29 = vector.load %arg2[%c4, %c0_16, %c0_17] : memref<9x8x128xbf16, #tpu.memory_space<vmem>>, vector<1x8x128xbf16>
    %30 = vector.shape_cast %29 : vector<1x8x128xbf16> to vector<8x128xbf16>
    %cst_18 = arith.constant dense<0.000000e+00> : vector<256x128xf32>
    %31 = tpu.matmul %28, %30, %cst_18 {dimension_numbers = #tpu.dot_dimension_numbers<[1], [0], [0], [1], [0, 0, 1, 1], [], []>} : vector<256x8xbf16>, vector<8x128xbf16>, vector<256x128xf32> -> vector<256x128xf32>
    %32 = arith.addf %26, %31 : vector<256x128xf32>
    %33 = vector.extract_strided_slice %1 {offsets = [1, 2, 0], sizes = [16, 16, 8], strides = [1, 1, 1]} : vector<18x18x8xbf16> to vector<16x16x8xbf16>
    %34 = vector.shape_cast %33 : vector<16x16x8xbf16> to vector<256x8xbf16>
    %c5 = arith.constant 5 : index
    %c0_19 = arith.constant 0 : index
    %c0_20 = arith.constant 0 : index
    %35 = vector.load %arg2[%c5, %c0_19, %c0_20] : memref<9x8x128xbf16, #tpu.memory_space<vmem>>, vector<1x8x128xbf16>
    %36 = vector.shape_cast %35 : vector<1x8x128xbf16> to vector<8x128xbf16>
    %cst_21 = arith.constant dense<0.000000e+00> : vector<256x128xf32>
    %37 = tpu.matmul %34, %36, %cst_21 {dimension_numbers = #tpu.dot_dimension_numbers<[1], [0], [0], [1], [0, 0, 1, 1], [], []>} : vector<256x8xbf16>, vector<8x128xbf16>, vector<256x128xf32> -> vector<256x128xf32>
    %38 = arith.addf %32, %37 : vector<256x128xf32>
    %39 = vector.extract_strided_slice %1 {offsets = [2, 0, 0], sizes = [16, 16, 8], strides = [1, 1, 1]} : vector<18x18x8xbf16> to vector<16x16x8xbf16>
    %40 = vector.shape_cast %39 : vector<16x16x8xbf16> to vector<256x8xbf16>
    %c6 = arith.constant 6 : index
    %c0_22 = arith.constant 0 : index
    %c0_23 = arith.constant 0 : index
    %41 = vector.load %arg2[%c6, %c0_22, %c0_23] : memref<9x8x128xbf16, #tpu.memory_space<vmem>>, vector<1x8x128xbf16>
    %42 = vector.shape_cast %41 : vector<1x8x128xbf16> to vector<8x128xbf16>
    %cst_24 = arith.constant dense<0.000000e+00> : vector<256x128xf32>
    %43 = tpu.matmul %40, %42, %cst_24 {dimension_numbers = #tpu.dot_dimension_numbers<[1], [0], [0], [1], [0, 0, 1, 1], [], []>} : vector<256x8xbf16>, vector<8x128xbf16>, vector<256x128xf32> -> vector<256x128xf32>
    %44 = arith.addf %38, %43 : vector<256x128xf32>
    %45 = vector.extract_strided_slice %1 {offsets = [2, 1, 0], sizes = [16, 16, 8], strides = [1, 1, 1]} : vector<18x18x8xbf16> to vector<16x16x8xbf16>
    %46 = vector.shape_cast %45 : vector<16x16x8xbf16> to vector<256x8xbf16>
    %c7 = arith.constant 7 : index
    %c0_25 = arith.constant 0 : index
    %c0_26 = arith.constant 0 : index
    %47 = vector.load %arg2[%c7, %c0_25, %c0_26] : memref<9x8x128xbf16, #tpu.memory_space<vmem>>, vector<1x8x128xbf16>
    %48 = vector.shape_cast %47 : vector<1x8x128xbf16> to vector<8x128xbf16>
    %cst_27 = arith.constant dense<0.000000e+00> : vector<256x128xf32>
    %49 = tpu.matmul %46, %48, %cst_27 {dimension_numbers = #tpu.dot_dimension_numbers<[1], [0], [0], [1], [0, 0, 1, 1], [], []>} : vector<256x8xbf16>, vector<8x128xbf16>, vector<256x128xf32> -> vector<256x128xf32>
    %50 = arith.addf %44, %49 : vector<256x128xf32>
    %51 = vector.extract_strided_slice %1 {offsets = [2, 2, 0], sizes = [16, 16, 8], strides = [1, 1, 1]} : vector<18x18x8xbf16> to vector<16x16x8xbf16>
    %52 = vector.shape_cast %51 : vector<16x16x8xbf16> to vector<256x8xbf16>
    %c8 = arith.constant 8 : index
    %c0_28 = arith.constant 0 : index
    %c0_29 = arith.constant 0 : index
    %53 = vector.load %arg2[%c8, %c0_28, %c0_29] : memref<9x8x128xbf16, #tpu.memory_space<vmem>>, vector<1x8x128xbf16>
    %54 = vector.shape_cast %53 : vector<1x8x128xbf16> to vector<8x128xbf16>
    %cst_30 = arith.constant dense<0.000000e+00> : vector<256x128xf32>
    %55 = tpu.matmul %52, %54, %cst_30 {dimension_numbers = #tpu.dot_dimension_numbers<[1], [0], [0], [1], [0, 0, 1, 1], [], []>} : vector<256x8xbf16>, vector<8x128xbf16>, vector<256x128xf32> -> vector<256x128xf32>
    %56 = arith.addf %50, %55 : vector<256x128xf32>
    %c0_31 = arith.constant 0 : index
    %c0_32 = arith.constant 0 : index
    %57 = vector.load %arg3[%c0_31, %c0_32] : memref<1x128xf32, #tpu.memory_space<vmem>>, vector<1x128xf32>
    %58 = vector.broadcast %57 : vector<1x128xf32> to vector<256x128xf32>
    %59 = arith.addf %56, %58 : vector<256x128xf32>
    %cst_33 = arith.constant 0.000000e+00 : f32
    %60 = vector.broadcast %cst_33 : f32 to vector<256x128xf32>
    %61 = arith.maximumf %59, %60 : vector<256x128xf32>
    %c0_34 = arith.constant 0 : index
    %c0_35 = arith.constant 0 : index
    %c0_36 = arith.constant 0 : index
    %62 = vector.load %arg4[%c0_34, %c0_35, %c0_36] : memref<1x256x128xf32, #tpu.memory_space<vmem>>, vector<1x256x128xf32>
    %63 = vector.shape_cast %62 : vector<1x256x128xf32> to vector<256x128xf32>
    %64 = vector.shape_cast %61 : vector<256x128xf32> to vector<1x256x128xf32>
    tpu.vector_store %arg4[%c0_34, %c0_35, %c0_36], %64 {strides = array<i32>} : memref<1x256x128xf32, #tpu.memory_space<vmem>>, vector<1x256x128xf32>,
    return
  }
  func.func @transform_0(%arg0: i32) -> (i32, i32, i32, i32) {
    %c0_i32 = arith.constant 0 : i32
    %c0_i32_0 = arith.constant 0 : i32
    %c0_i32_1 = arith.constant 0 : i32
    %c0_i32_2 = arith.constant 0 : i32
    return %arg0, %c0_i32, %c0_i32_0, %c0_i32_1 : i32, i32, i32, i32
  }
  func.func @transform_1(%arg0: i32) -> (i32, i32, i32) {
    %c0_i32 = arith.constant 0 : i32
    %c0_i32_0 = arith.constant 0 : i32
    %c0_i32_1 = arith.constant 0 : i32
    %c0_i32_2 = arith.constant 0 : i32
    return %c0_i32, %c0_i32_0, %c0_i32_1 : i32, i32, i32
  }
  func.func @transform_2(%arg0: i32) -> (i32, i32) {
    %c0_i32 = arith.constant 0 : i32
    %c0_i32_0 = arith.constant 0 : i32
    %c0_i32_1 = arith.constant 0 : i32
    return %c0_i32, %c0_i32_0 : i32, i32
  }
  func.func @transform_3(%arg0: i32) -> (i32, i32, i32) {
    %c0_i32 = arith.constant 0 : i32
    %c0_i32_0 = arith.constant 0 : i32
    %c0_i32_1 = arith.constant 0 : i32
    return %arg0, %c0_i32, %c0_i32_0 : i32, i32, i32
  }
}

</mosaic_0001>

<bundles_post_ra>
// kernel: tpu_custom_call.1
= control target key start
LH: loop header
LB: loop body
LE: loop exit
PB: predicated region body
PF: predicated region fallthrough
CT: control target
= control target key end

     0   :  { %8 = vsyncpa [#allocation3], 0  ;;  %s5511_s0 = inlined_call_operand.vmem [shape: bf16[2,18,18,8], index: 0, kind: input, shape index: {}]   ;;  %s5512_s1 = inlined_call_operand.vmem [shape: bf16[9,8,128], index: 1, kind: input, shape index: {}]   ;;  %s5513_s2 = inlined_call_operand.vmem [shape: f32[1,128], index: 2, kind: input, shape index: {}]   ;;  %s5514_s3 = inlined_call_operand.hbm [shape: f32[2,256,128], index: 3, kind: output, shape index: {}]  }
   0x1   :  { %10 = vsyncpa [#allocation3 + $0x1], 0  ;;  %s3917_s12 = smov 0   ;;  %s3919_s13 = smov 0  }
   0x2   :  { %s3921_s14 = smov 0   ;;  %s3923_s15 = smov 0  }
   0x3 LB: > { %s3938_s16 = sadd.s32 4294967295, %s3892_s15   ;;  %s3064_s17 = sadd.s32 4294967294, %s3892_s15   ;;  %s3892_s15 = sphi %s3923_s15, %s5722_s15   ;;  %s3888_s14 = sphi %s3921_s14, %s5721_s14   ;;  %s3884_s13 = sphi %s3919_s13, %s5720_s13   ;;  %s3880_s12 = sphi %s3917_s12, %s5719_s12  }
   0x4   : > { %s3942_s18 = sadd.s32 1, %s3892_s15   ;;  %s91_s19 = sadd.s32 1, %s3888_s14 }
   0x5   : > { %s88_s20 = ssub.s32 %s3892_s15, %s3942_s18  ;;  %p101_p0 = scmp.ne.s32.totalorder %s3888_s14, %s3884_s13 }
   0x6   : > { %p89_p1 = scmp.eq.s32.totalorder %s88_s20, 0  ;;  %p102_p2 = scmp.eq.s32.totalorder %s3938_s16, 1 }
   0x7   : > { %p107_p3 = scmp.ne.s32.totalorder %s3884_s13, %s3880_s12  ;;  %p108_p4 = scmp.eq.s32.totalorder %s3064_s17, 1 }
   0x8   : > { %s3953_s21 = scalar_select %p89_p1, %s3888_s14, %s91_s19  }
   0x9   : > { %p3955_p5 = por %p102_p2, %p101_p0  ;;  %p3959_p6 = por %p108_p4, %p107_p3 }
   0xa   : > { %p3067_p7 = scmp.ge.s32.totalorder %s3892_s15, 1  ;;  %p140_p8 = scmp.lt.s32.totalorder %s3892_s15, 3 }
   0xc   : > { %p141_p9 = pnand %p3067_p7, %p140_p8 }
   0xe   : > { %144 = sbr.rel (%p141_p9) target bundleno = 578 (0x242), region = 32 }
  0x13   : > { %v3070_v0 = vld [vmem:[%s5512_s1 + $0x4] sm:$0xf]  ;;  %vm711_vm0 = vcmask 1043456   ;;  %p164_p10 = scmp.lt.s32.totalorder %s3938_s16, 1  ;;  %v224_v2 = vld [vmem:[%s5512_s1] sm:$0xf] }
  0x14   : > { %3763 = vmatprep.subr.msk.bf16.mxu1 %vm711_vm0, %v3070_v0  ;;  %3762 = vmatprep.subr.msk.bf16.mxu0 %vm711_vm0, %v3070_v0  ;;  %v713_v1 = vsel %vm711_vm0, %v3070_v0, 0  ;;  %v3151_v3 = vld [vmem:[%s5512_s1 + $0x8] sm:$0xf]  ;;  %vm225_vm1 = vsmask.f32 3328  ;;  %v3987_v4 = vsel %vm711_vm0, %v224_v2, 0 }
  0x15   : > { %3761 = vmatpush3.bf16.msra.mxu1 %v713_v1  ;;  %3455 = vmatpush3.bf16.msra.mxu0 %v713_v1  ;;  %s165_s28 = scalar_select %p164_p10, %s3938_s16, 1  ;;  %vm226_vm2 = vsmask.f32 7440  ;;  %v3990_v5 = vsel %vm711_vm0, %v3151_v3, 0  ;;  %vm662_vm3 = vcmask 64512   ;;  %v5560_v32 = vmov 0 }
  0x16   : > { %3764 = vmatprep.subr.msk.bf16.mxu1 %vm711_vm0, %v224_v2  ;;  %3765 = vmatprep.subr.msk.bf16.mxu0 %vm711_vm0, %v3151_v3  ;;  %vm4029_vm4 = vmor %vm225_vm1, %vm226_vm2  ;;  %vm1184_vm5 = vcmask 1042432   ;;  %vm1185_vm6 = vcmask 1046532   ;;  %s161_s29 = sand.u32 1, %s3884_s13   ;;  %s3894_s19 = smov [#allocation2]  }
  0x17   : > { %s3772_s4 = smul.u32 216, %s165_s28  ;;  %v5561_v32 = vsel %vm4029_vm4, 4294967295, %v5560_v32  ;;  %vm4352_vm7 = vmor %vm1184_vm5, %vm1185_vm6  ;;  %s3068_s5 = sshll.u32 %s161_s29, 8 }
  0x18   : > { %5562 = vst [vmem:[#allocation5_spill] sm:$0xff] %v5561_v32  ;;  %s5322_s6 = scalar_lea.vmem [#allocation2], %s3068_s5  ;;  %s3836_s20 = sshll.u32 %s3894_s19, 4  ;;  %s3837_s20 = int_to_ptr.vmem [resolvable:$false] %s3836_s20 }
  0x19   : > { %s3984_s7 = scalar_lea.vmem %s5511_s0, %s3772_s4  ;;  %s3002_s8 = sshll.u32 %s5322_s6, 4  ;;  %s5465_s8 = int_to_ptr.vmem [resolvable:$true] %s3002_s8 }
  0x1a   : > { %v3993_v6 = vld [vmem:[%s3984_s7] sm:$0xf]  ;;  %v3996_v7 = vld [vmem:[%s3984_s7 + $0x4] sm:$0xf]  ;;  %v3999_v8 = vld [vmem:[%s3984_s7 + $0x8] sm:$0x1]  ;;  %p3839_p0 = scmp.lt.s32.totalorder %s5465_s8, %s3837_s20 }
  0x1b   : > { %v229_v9 = vshrl.u32 %v3993_v6, 16  ;;  %v232_v10 = vshll.u32 %v3993_v6, 16  ;;  %v238_v11 = vshll.u32 %v3996_v7, 16  ;;  %v242_v12 = vshrl.u32 %v3996_v7, 16  ;;  %v4006_v13 = vld [vmem:[%s3984_s7 + $0x60] sm:$0xf] }
  0x1c   : > { %v248_v14 = vshll.u32 %v3999_v8, 16  ;;  %v4011_v16 = vld [vmem:[%s3984_s7 + $0x64] sm:$0xf]  ;;  %v4014_v17 = vld [vmem:[%s3984_s7 + $0x68] sm:$0x1]  ;;  %v421_v23 = vshrl.u32 %v4006_v13, 16 }
  0x1d   : > { %v231_v18 = vrot.slane %v229_v9, 4  ;;  %v234_v19 = vrot.slane %v232_v10, 5  ;;  %v240_v20 = vrot.slane %v238_v11, 5  ;;  %v244_v21 = vrot.slane %v242_v12, 4  ;;  %v4022_v30 = vld [vmem:[%s3984_s7 + $0xc] sm:$0xf] }
  0x1e   : > { %v250_v22 = vrot.slane %v248_v14, 5  ;;  %v424_v24 = vshll.u32 %v4006_v13, 16  ;;  %v430_v25 = vshll.u32 %v4011_v16, 16  ;;  %v434_v28 = vshrl.u32 %v4011_v16, 16  ;;  %v4025_v31 = vld [vmem:[%s3984_s7 + $0x10] sm:$0xf] }
  0x1f   : > { %v235_v26 = vor.u32 %v234_v19, %v231_v18  ;;  %v245_v27 = vor.u32 %v244_v21, %v240_v20  ;;  %v440_v29 = vshll.u32 %v4014_v17, 16  ;;  %v423_v33 = vrot.slane %v421_v23, 4  ;;  %v4036_v42 = vld [vmem:[%s3984_s7 + $0x14] sm:$0x1]  ;;  %v4047_v54 = vld [vmem:[%s3984_s7 + $0x6c] sm:$0xf] }
  0x20   : > { %v426_v34 = vrot.slane %v424_v24, 5  ;;  %v432_v35 = vrot.slane %v430_v25, 5  ;;  %v436_v39 = vrot.slane %v434_v28, 4  ;;  %v253_v43 = vshrl.u32 %v4022_v30, 16  ;;  %5563 = vst [vmem:[#allocation6_spill] sm:$0xff] %v4047_v54  ;;  %s3832_s17 = scalar_lea.vmem %s5465_s8, 4096 }
  0x21   : > { %v236_v37 = vrot.slane %v235_v26, 4  ;;  %v246_v38 = vrot.slane %v245_v27, 4  ;;  %v442_v40 = vrot.slane %v440_v29, 5  ;;  %v256_v44 = vshll.u32 %v4022_v30, 16  ;;  %v4051_v59 = vld [vmem:[%s3984_s7 + $0x70] sm:$0xf]  ;;  %p3833_p11 = scmp.ne.s32.totalorder %s5465_s8, %s3832_s17 }
  0x22   : > { %v427_v41 = vor.u32 %v426_v34, %v423_v33  ;;  %v262_v45 = vshll.u32 %v4025_v31, 16  ;;  %v437_v48 = vor.u32 %v436_v39, %v432_v35  ;;  %v266_v49 = vshrl.u32 %v4025_v31, 16  ;;  %v4059_v0 = vld [vmem:[%s3984_s7 + $0x74] sm:$0x1]  ;;  %v4065_v10 = vld [vmem:[%s3984_s7 + $0x18] sm:$0xf] }
  0x23   : > { %v241_v46 = vsel %vm4029_vm4, %v236_v37, %v240_v20  ;;  %v251_v47 = vsel %vm4029_vm4, %v246_v38, %v250_v22  ;;  %v255_v52 = vrot.slane %v253_v43, 4  ;;  %v258_v53 = vrot.slane %v256_v44, 5  ;;  %5564 = vst [vmem:[#allocation7_spill] sm:$0xff] %v4059_v0  ;;  %v4074_v23 = vld [vmem:[%s3984_s7 + $0x1c] sm:$0xf]  ;;  %p3834_p12 = pnand %p3833_p11, %p3955_p5  ;;  %s3838_s24 = scalar_lea.vmem %s3837_s20, 8192 }
  0x24   : > { %v3071_v50 = vcombine.low %v241_v46, %v251_v47  ;;  %v428_v51 = vrot.slane %v427_v41, 4  ;;  %v438_v55 = vrot.slane %v437_v48, 4  ;;  %v264_v56 = vrot.slane %v262_v45, 5  ;;  %v4081_v27 = vld [vmem:[%s3984_s7 + $0x20] sm:$0x1]  ;;  %p3840_p1 = scmp.lt.s32.totalorder %s3838_s24, %s3832_s17 }
  0x25   : > { %v268_v57 = vrot.slane %v266_v49, 4  ;;  %v272_v58 = vshll.u32 %v4036_v42, 16  ;;  %v259_v61 = vor.u32 %v258_v53, %v255_v52  ;;  %v445_v9 = vshrl.u32 %v4047_v54, 16  ;;  %v4088_v37 = vld [vmem:[%s3984_s7 + $0x78] sm:$0xf]  ;;  %p3835_p13 = pneg %p3834_p12 }
  0x26   : > { %3456 = vmatprep.mubr.msk.bf16.mxu0 %vm662_vm3, %v3071_v50  ;;  %v433_v60 = vsel %vm4029_vm4, %v428_v51, %v432_v35  ;;  %v443_v1 = vsel %vm4029_vm4, %v438_v55, %v442_v40  ;;  %v448_v14 = vshll.u32 %v4047_v54, 16  ;;  %v454_v18 = vshll.u32 %v4051_v59, 16  ;;  %5566 = vst [vmem:[#allocation9_spill] sm:$0xff] %v4088_v37  ;;  %v4096_v43 = vld [vmem:[%s5512_s1 + $0x10] sm:$0xf]  ;;  %p3841_p2 = por %p3840_p1, %p3839_p0 }
  0x27   : > { %v269_v2 = vor.u32 %v268_v57, %v264_v56  ;;  %v274_v3 = vrot.slane %v272_v58, 5  ;;  %v4067_v11 = vcombine.low %v433_v60, %v443_v1  ;;  %v260_v12 = vrot.slane %v259_v61, 4  ;;  %v4101_v48 = vld [vmem:[%s3984_s7 + $0x7c] sm:$0xf]  ;;  %v4109_v58 = vld [vmem:[%s3984_s7 + $0x80] sm:$0x1] }
  0x28   : > { %v447_v20 = vrot.slane %v445_v9, 4  ;;  %v458_v21 = vshrl.u32 %v4051_v59, 16  ;;  %v464_v22 = vshll.u32 %v4059_v0, 16  ;;  %v450_v25 = vrot.slane %v448_v14, 5  ;;  %5568 = vst [vmem:[#allocation11_spill] sm:$0xff] %v4101_v48  ;;  %5569 = vst [vmem:[#allocation12_spill] sm:$0xff] %v4109_v58  ;;  %p3842_p3 = pnand %p3841_p2, %p3835_p13 }
  0x29   : > { %5565 = vst [vmem:[#allocation8_spill] sm:$0xff] %v4067_v11  ;;  %v270_v19 = vrot.slane %v269_v2, 4  ;;  %3472 = vmatprep.mubr.msk.bf16.mxu1 %vm662_vm3, %v4067_v11  ;;  %v265_v24 = vsel %vm4029_vm4, %v260_v12, %v264_v56  ;;  %v456_v26 = vrot.slane %v454_v18, 5  ;;  %v277_v28 = vshrl.u32 %v4065_v10, 16  ;;  %v4123_v18 = vld [vmem:[%s3984_s7 + $0x28] sm:$0xf] }
  0x2a   : > { %v460_v33 = vrot.slane %v458_v21, 4  ;;  %v466_v34 = vrot.slane %v464_v22, 5  ;;  %v280_v35 = vshll.u32 %v4065_v10, 16  ;;  %v451_v39 = vor.u32 %v450_v25, %v447_v20 }
  0x2b   : > { %v275_v29 = vsel %vm4029_vm4, %v270_v19, %v274_v3  ;;  %v279_v40 = vrot.slane %v277_v28, 4  ;;  %v286_v41 = vshll.u32 %v4074_v23, 16  ;;  %v290_v46 = vshrl.u32 %v4074_v23, 16  ;;  %v4115_v3 = vld [vmem:[%s3984_s7 + $0x24] sm:$0xf] }
  0x2c   : > { %v4090_v38 = vcombine.low %v265_v24, %v275_v29  ;;  %v461_v44 = vor.u32 %v460_v33, %v456_v26  ;;  %v282_v45 = vrot.slane %v280_v35, 5  ;;  %v296_v47 = vshll.u32 %v4081_v27, 16  ;;  %v4131_v24 = vld [vmem:[%s5512_s1 + $0xc] sm:$0xf] }
  0x2d   : > { %v452_v49 = vrot.slane %v451_v39, 4  ;;  %v288_v50 = vrot.slane %v286_v41, 5  ;;  %v469_v51 = vshrl.u32 %v4088_v37, 16  ;;  %v472_v52 = vshll.u32 %v4088_v37, 16  ;;  %v4136_v29 = vld [vmem:[%s3984_s7 + $0x2c] sm:$0x1] }
  0x2e   : > { %5567 = vst [vmem:[#allocation10_spill] sm:$0xff] %v4090_v38  ;;  %3457 = vmatmul.mubr.msk.bf16.vlgmr.msra.gmra.mxu0 %vm662_vm3, %v4090_v38  ;;  %v462_v53 = vrot.slane %v461_v44, 4  ;;  %v283_v55 = vor.u32 %v282_v45, %v279_v40  ;;  %v292_v56 = vrot.slane %v290_v46, 4  ;;  %v298_v57 = vrot.slane %v296_v47, 5  ;;  %v4144_v41 = vld [vmem:[%s3984_s7 + $0x84] sm:$0xf] }
  0x2f   : > { %3523 = vmatpush3.bf16.msra.mxu0 %v3990_v5  ;;  %v457_v60 = vsel %vm4029_vm4, %v452_v49, %v456_v26  ;;  %v471_v61 = vrot.slane %v469_v51, 4  ;;  %v474_v1 = vrot.slane %v472_v52, 5  ;;  %v478_v2 = vshll.u32 %v4101_v48, 16  ;;  %v4151_v49 = vld [vmem:[%s3984_s7 + $0x88] sm:$0xf] }
  0x30   : > { %3767 = vmatprep.subr.msk.bf16.mxu0 %vm711_vm0, %v4096_v43  ;;  %v467_v5 = vsel %vm4029_vm4, %v462_v53, %v466_v34  ;;  %v284_v9 = vrot.slane %v283_v55, 4  ;;  %v293_v12 = vor.u32 %v292_v56, %v288_v50  ;;  %v482_v14 = vshrl.u32 %v4101_v48, 16  ;;  %v4291_v38 = vld [vmem:[%s3984_s7 + $0xb0] sm:$0x1]  ;;  %v4313_v48 = vld [vmem:[%s3984_s7 + $0x5c] sm:$0x1] }
  0x31   : > { %v4125_v19 = vcombine.low %v457_v60, %v467_v5  ;;  %v475_v20 = vor.u32 %v474_v1, %v471_v61  ;;  %v480_v21 = vrot.slane %v478_v2, 5  ;;  %v488_v22 = vshll.u32 %v4109_v58, 16  ;;  %5581 = vst [vmem:[#allocation24_spill] sm:$0xff] %v4291_v38 }
  0x32   : > { %v289_v25 = vsel %vm4029_vm4, %v284_v9, %v288_v50  ;;  %v294_v26 = vrot.slane %v293_v12, 4  ;;  %v484_v28 = vrot.slane %v482_v14, 4  ;;  %v301_v33 = vshrl.u32 %v4115_v3, 16  ;;  %v4170_v9 = vld [vmem:[%s3984_s7 + $0x30] sm:$0xf] }
  0x33   : > { %5570 = vst [vmem:[#allocation13_spill] sm:$0xff] %v4125_v19  ;;  %3473 = vmatmul.mubr.msk.bf16.vlgmr.msra.gmra.mxu1 %vm662_vm3, %v4125_v19  ;;  %v476_v34 = vrot.slane %v475_v20, 4  ;;  %v490_v35 = vrot.slane %v488_v22, 5  ;;  %v304_v39 = vshll.u32 %v4115_v3, 16  ;;  %v310_v40 = vshll.u32 %v4123_v18, 16 }
  0x34   : > { %3489 = vmatpush3.bf16.msra.mxu1 %v3987_v4  ;;  %v299_v44 = vsel %vm4029_vm4, %v294_v26, %v298_v57  ;;  %v485_v45 = vor.u32 %v484_v28, %v480_v21  ;;  %v303_v46 = vrot.slane %v301_v33, 4  ;;  %v314_v47 = vshrl.u32 %v4123_v18, 16  ;;  %v4161_v57 = vld [vmem:[%s3984_s7 + $0x8c] sm:$0x1]  ;;  %v4175_v22 = vld [vmem:[%s3984_s7 + $0x34] sm:$0xf] }
  0x35   : > { %v4153_v50 = vcombine.low %v289_v25, %v299_v44  ;;  %v481_v51 = vsel %vm4029_vm4, %v476_v34, %v480_v21  ;;  %v306_v52 = vrot.slane %v304_v39, 5  ;;  %v312_v53 = vrot.slane %v310_v40, 5  ;;  %3766 = vmatprep.subr.msk.bf16.mxu1 %vm711_vm0, %v4131_v24 }
  0x36   : > { %v486_v4 = vrot.slane %v485_v45, 4  ;;  %v316_v55 = vrot.slane %v314_v47, 4  ;;  %v320_v56 = vshll.u32 %v4136_v29, 16  ;;  %v493_v60 = vshrl.u32 %v4144_v41, 16 }
  0x37   : > { %5571 = vst [vmem:[#allocation14_spill] sm:$0xff] %v4153_v50  ;;  %3460 = vmatprep.mubr.msk.bf16.mxu0 %vm662_vm3, %v4153_v50  ;;  %v307_v61 = vor.u32 %v306_v52, %v303_v46  ;;  %v496_v1 = vshll.u32 %v4144_v41, 16  ;;  %v502_v2 = vshll.u32 %v4151_v49, 16  ;;  %v506_v5 = vshrl.u32 %v4151_v49, 16  ;;  %v4186_v46 = vld [vmem:[%s3984_s7 + $0x38] sm:$0x1] }
  0x38   : > { %v491_v12 = vsel %vm4029_vm4, %v486_v4, %v490_v35  ;;  %v317_v14 = vor.u32 %v316_v55, %v312_v53  ;;  %v322_v20 = vrot.slane %v320_v56, 5  ;;  %v495_v21 = vrot.slane %v493_v60, 4  ;;  %v4191_v52 = vld [vmem:[%s3984_s7 + $0x90] sm:$0xf] }
  0x39   : > { %v4177_v25 = vcombine.low %v481_v51, %v491_v12  ;;  %v308_v26 = vrot.slane %v307_v61, 4  ;;  %v498_v28 = vrot.slane %v496_v1, 5  ;;  %v504_v33 = vrot.slane %v502_v2, 5  ;;  %v4196_v61 = vld [vmem:[%s3984_s7 + $0x94] sm:$0xf] }
  0x3a   : > { %v318_v34 = vrot.slane %v317_v14, 4  ;;  %v508_v39 = vrot.slane %v506_v5, 4  ;;  %v512_v40 = vshll.u32 %v4161_v57, 16  ;;  %v325_v44 = vshrl.u32 %v4170_v9, 16 }
  0x3b   : > { %5572 = vst [vmem:[#allocation15_spill] sm:$0xff] %v4177_v25  ;;  %3476 = vmatprep.mubr.msk.bf16.mxu1 %vm662_vm3, %v4177_v25  ;;  %v313_v35 = vsel %vm4029_vm4, %v308_v26, %v312_v53  ;;  %v499_v45 = vor.u32 %v498_v28, %v495_v21  ;;  %v328_v47 = vshll.u32 %v4170_v9, 16  ;;  %v334_v51 = vshll.u32 %v4175_v22, 16  ;;  %v4242_v25 = vld [vmem:[%s3984_s7 + $0xa0] sm:$0xf] }
  0x3c   : > { %v323_v4 = vsel %vm4029_vm4, %v318_v34, %v322_v20  ;;  %v509_v55 = vor.u32 %v508_v39, %v504_v33  ;;  %v514_v56 = vrot.slane %v512_v40, 5  ;;  %v327_v60 = vrot.slane %v325_v44, 4  ;;  %v4208_v34 = vld [vmem:[%s3984_s7 + $0x98] sm:$0x1]  ;;  %v4213_v44 = vld [vmem:[%s3984_s7 + $0x3c] sm:$0xf] }
  0x3d   : > { %v4198_v53 = vcombine.low %v313_v35, %v323_v4  ;;  %v500_v1 = vrot.slane %v499_v45, 4  ;;  %v330_v2 = vrot.slane %v328_v47, 5  ;;  %v336_v5 = vrot.slane %v334_v51, 5  ;;  %v4218_v4 = vld [vmem:[%s3984_s7 + $0x40] sm:$0xf] }
  0x3e   : > { %v510_v12 = vrot.slane %v509_v55, 4  ;;  %v338_v14 = vshrl.u32 %v4175_v22, 16  ;;  %v344_v21 = vshll.u32 %v4186_v46, 16  ;;  %v517_v20 = vshrl.u32 %v4191_v52, 16 }
  0x3f   : > { %5573 = vst [vmem:[#allocation16_spill] sm:$0xff] %v4198_v53  ;;  %3461 = vmatmul.mubr.msk.bf16.gmra.mxu0 %vm662_vm3, %v4198_v53  ;;  %v505_v26 = vsel %vm4029_vm4, %v500_v1, %v504_v33  ;;  %v331_v28 = vor.u32 %v330_v2, %v327_v60  ;;  %v520_v39 = vshll.u32 %v4191_v52, 16  ;;  %v526_v40 = vshll.u32 %v4196_v61, 16 }
  0x40   : > { %v515_v35 = vsel %vm4029_vm4, %v510_v12, %v514_v56  ;;  %v340_v45 = vrot.slane %v338_v14, 4  ;;  %v346_v47 = vrot.slane %v344_v21, 5  ;;  %v519_v51 = vrot.slane %v517_v20, 4  ;;  %v4230_v14 = vld [vmem:[%s3984_s7 + $0x44] sm:$0x1] }
  0x41   : > { %v4220_v33 = vcombine.low %v505_v26, %v515_v35  ;;  %v332_v55 = vrot.slane %v331_v28, 4  ;;  %v522_v60 = vrot.slane %v520_v39, 5  ;;  %v528_v1 = vrot.slane %v526_v40, 5  ;;  %v4235_v26 = vld [vmem:[%s3984_s7 + $0x9c] sm:$0xf] }
  0x42   : > { %v341_v2 = vor.u32 %v340_v45, %v336_v5  ;;  %v530_v36 = vshrl.u32 %v4196_v61, 16  ;;  %v536_v63 = vshll.u32 %v4208_v34, 16  ;;  %v349_v15 = vshrl.u32 %v4213_v44, 16 }
  0x43   : > { %5574 = vst [vmem:[#allocation17_spill] sm:$0xff] %v4220_v33  ;;  %3477 = vmatmul.mubr.msk.bf16.gmra.mxu1 %vm662_vm3, %v4220_v33  ;;  %v337_v56 = vsel %vm4029_vm4, %v332_v55, %v336_v5  ;;  %v523_v12 = vor.u32 %v522_v60, %v519_v51  ;;  %v352_v21 = vshll.u32 %v4213_v44, 16  ;;  %v358_v20 = vshll.u32 %v4218_v4, 16 }
  0x44   : > { %v342_v28 = vrot.slane %v341_v2, 4  ;;  %v532_v39 = vrot.slane %v530_v36, 4  ;;  %v538_v40 = vrot.slane %v536_v63, 5  ;;  %v351_v35 = vrot.slane %v349_v15, 4 }
  0x45   : > { %v524_v45 = vrot.slane %v523_v12, 4  ;;  %v354_v62 = vrot.slane %v352_v21, 5  ;;  %v360_v33 = vrot.slane %v358_v20, 5  ;;  %v362_v5 = vshrl.u32 %v4218_v4, 16  ;;  %v4250_v21 = vld [vmem:[%s3984_s7 + $0xa4] sm:$0x1] }
  0x46   : > { %v347_v51 = vsel %vm4029_vm4, %v342_v28, %v346_v47  ;;  %v533_v55 = vor.u32 %v532_v39, %v528_v1  ;;  %v368_v60 = vshll.u32 %v4230_v14, 16  ;;  %v541_v2 = vshrl.u32 %v4235_v26, 16  ;;  %5576 = vst [vmem:[#allocation19_spill] sm:$0xff] %v4250_v21  ;;  %v4253_v20 = vld [vmem:[%s3984_s7 + $0x48] sm:$0xf] }
  0x47   : > { %v4245_v36 = vcombine.low %v337_v56, %v347_v51  ;;  %v529_v15 = vsel %vm4029_vm4, %v524_v45, %v528_v1  ;;  %v355_v63 = vor.u32 %v354_v62, %v351_v35  ;;  %v364_v12 = vrot.slane %v362_v5, 4 }
  0x48   : > { %v534_v47 = vrot.slane %v533_v55, 4  ;;  %v370_v28 = vrot.slane %v368_v60, 5  ;;  %v543_v39 = vrot.slane %v541_v2, 4  ;;  %v544_v19 = vshll.u32 %v4235_v26, 16  ;;  %v4264_v55 = vld [vmem:[%s3984_s7 + $0x4c] sm:$0xf] }
  0x49   : > { %5575 = vst [vmem:[#allocation18_spill] sm:$0xff] %v4245_v36  ;;  %3464 = vmatprep.mubr.msk.bf16.mxu0 %vm662_vm3, %v4245_v36  ;;  %v356_v56 = vrot.slane %v355_v63, 4  ;;  %v365_v51 = vor.u32 %v364_v12, %v360_v33  ;;  %v550_v1 = vshll.u32 %v4242_v25, 16  ;;  %v554_v62 = vshrl.u32 %v4242_v25, 16  ;;  %v4272_v36 = vld [vmem:[%s3984_s7 + $0x50] sm:$0x1] }
  0x4a   : > { %v539_v35 = vsel %vm4029_vm4, %v534_v47, %v538_v40  ;;  %v546_v45 = vrot.slane %v544_v19, 5  ;;  %v560_v5 = vshll.u32 %v4250_v21, 16  ;;  %v373_v60 = vshrl.u32 %v4253_v20, 16  ;;  %v4275_v47 = vld [vmem:[%s3984_s7 + $0xa8] sm:$0xf] }
  0x4b   : > { %v4267_v2 = vcombine.low %v529_v15, %v539_v35  ;;  %v361_v63 = vsel %vm4029_vm4, %v356_v56, %v360_v33  ;;  %v366_v12 = vrot.slane %v365_v51, 4  ;;  %v552_v11 = vrot.slane %v550_v1, 5  ;;  %5578 = vst [vmem:[#allocation21_spill] sm:$0xff] %v4275_v47 }
  0x4c   : > { %v547_v53 = vor.u32 %v546_v45, %v543_v39  ;;  %v556_v50 = vrot.slane %v554_v62, 4  ;;  %v562_v40 = vrot.slane %v560_v5, 5  ;;  %v375_v19 = vrot.slane %v373_v60, 4  ;;  %v4288_v45 = vld [vmem:[%s3984_s7 + $0xac] sm:$0xf] }
  0x4d   : > { %5577 = vst [vmem:[#allocation20_spill] sm:$0xff] %v4267_v2  ;;  %3480 = vmatprep.mubr.msk.bf16.mxu1 %vm662_vm3, %v4267_v2  ;;  %v371_v15 = vsel %vm4029_vm4, %v366_v12, %v370_v28  ;;  %v376_v33 = vshll.u32 %v4253_v20, 16  ;;  %v382_v56 = vshll.u32 %v4264_v55, 16  ;;  %v386_v51 = vshrl.u32 %v4264_v55, 16  ;;  %5580 = vst [vmem:[#allocation23_spill] sm:$0xff] %v4288_v45 }
  0x4e   : > { %v4284_v1 = vcombine.low %v361_v63, %v371_v15  ;;  %v548_v39 = vrot.slane %v547_v53, 4  ;;  %v557_v62 = vor.u32 %v556_v50, %v552_v11  ;;  %v392_v35 = vshll.u32 %v4272_v36, 16 }
  0x4f   : > { %v378_v5 = vrot.slane %v376_v33, 5  ;;  %v384_v60 = vrot.slane %v382_v56, 5  ;;  %v388_v2 = vrot.slane %v386_v51, 4  ;;  %v565_v28 = vshrl.u32 %v4275_v47, 16  ;;  %v4301_v51 = vld [vmem:[%s3984_s7 + $0x54] sm:$0xf] }
  0x50   : > { %5579 = vst [vmem:[#allocation22_spill] sm:$0xff] %v4284_v1  ;;  %3465 = vmatmul.mubr.msk.bf16.gmra.mxu0 %vm662_vm3, %v4284_v1  ;;  %v553_v53 = vsel %vm4029_vm4, %v548_v39, %v552_v11  ;;  %v558_v50 = vrot.slane %v557_v62, 4  ;;  %v394_v63 = vrot.slane %v392_v35, 5  ;;  %v568_v12 = vshll.u32 %v4275_v47, 16  ;;  %v4308_v62 = vld [vmem:[%s3984_s7 + $0x58] sm:$0xf] }
  0x51   : > { %v379_v15 = vor.u32 %v378_v5, %v375_v19  ;;  %v389_v58 = vor.u32 %v388_v2, %v384_v60  ;;  %v567_v33 = vrot.slane %v565_v28, 4  ;;  %v574_v56 = vshll.u32 %v4288_v45, 16 }
  0x52   : > { %v563_v1 = vsel %vm4029_vm4, %v558_v50, %v562_v40  ;;  %v570_v37 = vrot.slane %v568_v12, 5  ;;  %v578_v11 = vshrl.u32 %v4288_v45, 16  ;;  %v584_v39 = vshll.u32 %v4291_v38, 16 }
  0x53   : > { %v4310_v2 = vcombine.low %v553_v53, %v563_v1  ;;  %v380_v19 = vrot.slane %v379_v15, 4  ;;  %v390_v35 = vrot.slane %v389_v58, 4  ;;  %v576_v5 = vrot.slane %v574_v56, 5 }
  0x54   : > { %v571_v28 = vor.u32 %v570_v37, %v567_v33  ;;  %v580_v0 = vrot.slane %v578_v11, 4  ;;  %v586_v54 = vrot.slane %v584_v39, 5  ;;  %v397_v40 = vshrl.u32 %v4301_v51, 16  ;;  %v4325_v37 = vld [vmem:[%s3984_s7 + $0xb4] sm:$0xf] }
  0x55   : > { %5582 = vst [vmem:[#allocation25_spill] sm:$0xff] %v4310_v2  ;;  %3481 = vmatmul.mubr.msk.bf16.gmra.mxu1 %vm662_vm3, %v4310_v2  ;;  %v385_v50 = vsel %vm4029_vm4, %v380_v19, %v384_v60  ;;  %v395_v1 = vsel %vm4029_vm4, %v390_v35, %v394_v63  ;;  %v400_v58 = vshll.u32 %v4301_v51, 16  ;;  %v406_v53 = vshll.u32 %v4308_v62, 16  ;;  %5583 = vst [vmem:[#allocation26_spill] sm:$0xff] %v4325_v37  ;;  %v4330_v11 = vld [vmem:[%s3984_s7 + $0xb8] sm:$0xf] }
  0x56   : > { %v4327_v12 = vcombine.low %v385_v50, %v395_v1  ;;  %v572_v15 = vrot.slane %v571_v28, 4  ;;  %v581_v33 = vor.u32 %v580_v0, %v576_v5  ;;  %v399_v56 = vrot.slane %v397_v40, 4 }
  0x57   : > { %v402_v39 = vrot.slane %v400_v58, 5  ;;  %v408_v2 = vrot.slane %v406_v53, 5  ;;  %v410_v60 = vshrl.u32 %v4308_v62, 16  ;;  %v416_v63 = vshll.u32 %v4313_v48, 16  ;;  %v4341_v58 = vld [vmem:[%s3984_s7 + $0xbc] sm:$0x1] }
  0x58   : > { %5584 = vst [vmem:[#allocation27_spill] sm:$0xff] %v4327_v12  ;;  %3468 = vmatprep.mubr.msk.bf16.mxu0 %vm662_vm3, %v4327_v12  ;;  %v577_v19 = vsel %vm4029_vm4, %v572_v15, %v576_v5  ;;  %v582_v35 = vrot.slane %v581_v33, 4  ;;  %v589_v28 = vshrl.u32 %v4325_v37, 16  ;;  %v592_v0 = vshll.u32 %v4325_v37, 16 }
  0x59   : > { %v403_v40 = vor.u32 %v402_v39, %v399_v56  ;;  %v412_v50 = vrot.slane %v410_v60, 4  ;;  %v418_v1 = vrot.slane %v416_v63, 5  ;;  %v598_v53 = vshll.u32 %v4330_v11, 16 }
  0x5a   : > { %v587_v38 = vsel %vm4029_vm4, %v582_v35, %v586_v54  ;;  %v591_v47 = vrot.slane %v589_v28, 4  ;;  %v594_v12 = vrot.slane %v592_v0, 5  ;;  %v602_v45 = vshrl.u32 %v4330_v11, 16 }
  0x5b   : > { %v4347_v5 = vcombine.low %v577_v19, %v587_v38  ;;  %v404_v15 = vrot.slane %v403_v40, 4  ;;  %v413_v33 = vor.u32 %v412_v50, %v408_v2  ;;  %v600_v21 = vrot.slane %v598_v53, 5 }
  0x5c   : > { %v595_v37 = vor.u32 %v594_v12, %v591_v47  ;;  %v604_v56 = vrot.slane %v602_v45, 4  ;;  %v608_v39 = vshll.u32 %v4341_v58, 16  ;;  %v3135_v54 = vrot.slane %v3993_v6, 9 }
  0x5d   : > { %3484 = vmatprep.mubr.msk.bf16.mxu1 %vm662_vm3, %v4347_v5  ;;  %v409_v38 = vsel %vm4029_vm4, %v404_v15, %v408_v2  ;;  %v414_v63 = vrot.slane %v413_v33, 4  ;;  %v1189_v47 = vrot.slane %v3996_v7, 5  ;;  %v4364_v45 = vcombine.low %v4022_v30, %v4025_v31 }
  0x5e   : > { %v596_v12 = vrot.slane %v595_v37, 4  ;;  %v605_v19 = vor.u32 %v604_v56, %v600_v21  ;;  %v610_v35 = vrot.slane %v608_v39, 5  ;;  %v3136_v28 = vrot.slane %v4022_v30, 9 }
  0x5f   : > { %v419_v0 = vsel %vm4029_vm4, %v414_v63, %v418_v1  ;;  %v1190_v40 = vsel %vm4352_vm7, %v3135_v54, %v1189_v47  ;;  %v1191_v50 = vrot.slane %v1189_v47, 4  ;;  %v5587_v2 = vrot.slane %v4025_v31, 5 }
  0x60   : > { %v4373_v15 = vcombine.low %v409_v38, %v419_v0  ;;  %v601_v33 = vsel %vm4029_vm4, %v596_v12, %v600_v21  ;;  %v606_v37 = vrot.slane %v605_v19, 4  ;;  %v5589_v1 = vrot.slane %v3999_v8, 5 }
  0x61   : > { %v1198_v53 = vrot.slane %v5587_v2, 4  ;;  %v5588_v56 = vmov %v5587_v2  ;;  %v5590_v54 = vrot.slane %v4036_v42, 5  ;;  %v4391_v63 = vcombine.low %v4065_v10, %v4074_v23 }
  0x62   : > { %v1197_v30 = vsel %vm4352_vm7, %v3136_v28, %v5588_v56  ;;  %v1193_v39 = vsel %vm4352_vm7, %v1191_v50, %v5589_v1  ;;  %v3137_v21 = vrot.slane %v4065_v10, 9  ;;  %3469 = vmatmul.mubr.msk.bf16.gmra.mxu0 %vm662_vm3, %v4373_v15  ;;  %v611_v8 = vsel %vm4029_vm4, %v606_v37, %v610_v35 }
  0x63   : > { %v1200_v38 = vsel %vm4352_vm7, %v1198_v53, %v5590_v54  ;;  %v3152_v31 = vcombine.low %v1190_v40, %v1193_v39  ;;  %v1203_v42 = vrot.slane %v4074_v23, 5  ;;  %v4401_v12 = vcombine.low %v601_v33, %v611_v8 }
  0x64   : > { %v4398_v47 = vcombine.low %v1197_v30, %v1200_v38  ;;  %v1206_v19 = vrot.slane %v4081_v27, 5  ;;  %v1210_v0 = vrot.slane %v4123_v18, 5  ;;  %v3138_v35 = vrot.slane %v4115_v3, 9 }
  0x65   : > { %5591 = vst [vmem:[#allocation28_spill] sm:$0xff] %v4401_v12  ;;  %3524 = vmatprep.mubr.msk.bf16.mxu0 %vm662_vm3, %v3152_v31  ;;  %v1204_v10 = vsel %vm4352_vm7, %v3137_v21, %v1203_v42  ;;  %v1205_v28 = vrot.slane %v1203_v42, 4  ;;  %3485 = vmatmul.mubr.msk.bf16.gmra.mxu1 %vm662_vm3, %v4401_v12  ;;  %v3139_v40 = vrot.slane %v4170_v9, 9  ;;  %v1217_v23 = vrot.slane %v4175_v22, 5 }
  0x66   : > { %v5592_v27 = vcombine.low %v3993_v6, %v3996_v7  ;;  %v1212_v2 = vrot.slane %v1210_v0, 4  ;;  %v1213_v53 = vrot.slane %v4136_v29, 5  ;;  %v1220_v33 = vrot.slane %v4186_v46, 5  ;;  %v4436_v46 = vld [vmem:[%s5512_s1 + $0x18] sm:$0xf] }
  0x67   : > { %v1207_v50 = vsel %vm4352_vm7, %v1205_v28, %v1206_v19  ;;  %v1219_v56 = vrot.slane %v1217_v23, 4  ;;  %v1832_v30 = vsel %vm711_vm0, %v4096_v43, 0  ;;  %v1224_v1 = vrot.slane %v4218_v4, 5  ;;  %v4453_v19 = vld [vmem:[%s5512_s1 + $0x14] sm:$0xf] }
  0x68   : > { %3490 = vmatprep.mubr.msk.bf16.mxu1 %vm662_vm3, %v5592_v27  ;;  %v4421_v37 = vcombine.low %v1204_v10, %v1207_v50  ;;  %v1604_v6 = vsel %vm711_vm0, %v4131_v24, 0  ;;  %v1211_v7 = vsel %vm4352_vm7, %v3138_v35, %v1210_v0  ;;  %v1218_v39 = vsel %vm4352_vm7, %v3139_v40, %v1217_v23 }
  0x69   : > { %v1231_v29 = vrot.slane %v4264_v55, 5  ;;  %v1214_v43 = vsel %vm4352_vm7, %v1212_v2, %v1213_v53  ;;  %v1221_v24 = vsel %vm4352_vm7, %v1219_v56, %v1220_v33  ;;  %v3140_v54 = vrot.slane %v4213_v44, 9 }
  0x6a   : > { %3525 = vmatmul.mubr.msk.bf16.vlgmr.msra.gmra.mxu0 %vm662_vm3, %v4398_v47  ;;  %v1227_v38 = vrot.slane %v4230_v14, 5  ;;  %v1226_v21 = vrot.slane %v1224_v1, 4  ;;  %v3141_v8 = vrot.slane %v4253_v20, 9  ;;  %v1234_v42 = vrot.slane %v4272_v36, 5 }
  0x6b   : > { %3591 = vmatpush3.bf16.msra.mxu0 %v1832_v30  ;;  %3528 = vmatprep.mubr.msk.bf16.mxu0 %vm662_vm3, %v4421_v37  ;;  %v1233_v31 = vrot.slane %v1231_v29, 4  ;;  %v4461_v14 = vcombine.low %v1211_v7, %v1214_v43  ;;  %v4463_v10 = vcombine.low %v1218_v39, %v1221_v24  ;;  %v1225_v36 = vsel %vm4352_vm7, %v3140_v54, %v1224_v1 }
  0x6c   : > { %3769 = vmatprep.subr.msk.bf16.mxu0 %vm711_vm0, %v4436_v46  ;;  %v1228_v28 = vsel %vm4352_vm7, %v1226_v21, %v1227_v38  ;;  %v1232_v0 = vsel %vm4352_vm7, %v3141_v8, %v1231_v29  ;;  %v1238_v40 = vrot.slane %v4308_v62, 5  ;;  %v1248_v23 = vrot.slane %v4014_v17, 5  ;;  %v5593_v8 = vld [vmem:[#allocation19_spill] sm:$0xff] }
  0x6d   : > { %3491 = vmatmul.mubr.msk.bf16.vlgmr.msra.gmra.mxu1 %vm662_vm3, %v4364_v45  ;;  %v1235_v35 = vsel %vm4352_vm7, %v1233_v31, %v1234_v42  ;;  %v3142_v27 = vrot.slane %v4301_v51, 9  ;;  %v3143_v50 = vrot.slane %v4006_v13, 9  ;;  %v1245_v2 = vrot.slane %v4011_v16, 5  ;;  %v5594_v42 = vld [vmem:[#allocation23_spill] sm:$0xff] }
  0x6e   : > { %3557 = vmatpush3.bf16.msra.mxu1 %v1604_v6  ;;  %3494 = vmatprep.mubr.msk.bf16.mxu1 %vm662_vm3, %v4391_v63  ;;  %v4482_v53 = vcombine.low %v4115_v3, %v4123_v18  ;;  %v4486_v33 = vcombine.low %v4170_v9, %v4175_v22  ;;  %v4490_v56 = vcombine.low %v4213_v44, %v4218_v4  ;;  %v1241_v3 = vrot.slane %v4313_v48, 5 }
  0x6f   : > { %3768 = vmatprep.subr.msk.bf16.mxu1 %vm711_vm0, %v4453_v19  ;;  %v4494_v17 = vcombine.low %v4253_v20, %v4264_v55  ;;  %v4498_v30 = vcombine.low %v1225_v36, %v1228_v28  ;;  %v4500_v1 = vcombine.low %v1232_v0, %v1235_v35  ;;  %v4505_v18 = vcombine.low %v4144_v41, %v4151_v49  ;;  %v5595_v36 = vld [vmem:[#allocation21_spill] sm:$0xff] }
  0x70   : > { %v1240_v9 = vrot.slane %v1238_v40, 4  ;;  %v3146_v22 = vrot.slane %v4144_v41, 9  ;;  %v1266_v44 = vrot.slane %v4151_v49, 5  ;;  %v1269_v4 = vrot.slane %v4161_v57, 5 }
  0x71   : > { %v1239_v20 = vsel %vm4352_vm7, %v3142_v27, %v1238_v40  ;;  %v1246_v48 = vsel %vm4352_vm7, %v3143_v50, %v1245_v2  ;;  %v1247_v55 = vrot.slane %v1245_v2, 4  ;;  %v4518_v6 = vcombine.low %v4191_v52, %v4196_v61  ;;  %v5596_v40 = vld [vmem:[#allocation24_spill] sm:$0xff] }
  0x72   : > { %3529 = vmatmul.mubr.msk.bf16.gmra.mxu0 %vm662_vm3, %v4461_v14  ;;  %v1267_v41 = vsel %vm4352_vm7, %v3146_v22, %v1266_v44  ;;  %v1268_v49 = vrot.slane %v1266_v44, 4  ;;  %v3147_v57 = vrot.slane %v4191_v52, 9  ;;  %v1273_v7 = vrot.slane %v4196_v61, 5 }
  0x73   : > { %3532 = vmatprep.mubr.msk.bf16.mxu0 %vm662_vm3, %v4463_v10  ;;  %v1252_v39 = vrot.slane %v4051_v59, 5  ;;  %v1276_v29 = vrot.slane %v4208_v34, 5  ;;  %v4532_v43 = vcombine.low %v4235_v26, %v4242_v25  ;;  %v3148_v24 = vrot.slane %v4235_v26, 9 }
  0x74   : > { %v1242_v54 = vsel %vm4352_vm7, %v1240_v9, %v1241_v3  ;;  %v1270_v52 = vsel %vm4352_vm7, %v1268_v49, %v1269_v4  ;;  %v1274_v61 = vsel %vm4352_vm7, %v3147_v57, %v1273_v7  ;;  %v1275_v38 = vrot.slane %v1273_v7, 4  ;;  %v5597_v3 = vld [vmem:[#allocation26_spill] sm:$0xff]  ;;  %v5598_v57 = vld [vmem:[#allocation11_spill] sm:$0xff] }
  0x75   : > { %3495 = vmatmul.mubr.msk.bf16.gmra.mxu1 %vm662_vm3, %v4482_v53  ;;  %v4541_v21 = vcombine.low %v1267_v41, %v1270_v52  ;;  %v1280_v34 = vrot.slane %v4242_v25, 5  ;;  %v1283_v31 = vrot.slane %v5593_v8, 5  ;;  %v4547_v28 = vcombine.low %v5595_v36, %v5594_v42 }
  0x76   : > { %3498 = vmatprep.mubr.msk.bf16.mxu1 %vm662_vm3, %v4486_v33  ;;  %v1277_v26 = vsel %vm4352_vm7, %v1275_v38, %v1276_v29  ;;  %v3149_v0 = vrot.slane %v5595_v36, 9  ;;  %v1287_v35 = vrot.slane %v5594_v42, 5  ;;  %v1290_v27 = vrot.slane %v5596_v40, 5  ;;  %v5600_v42 = vld [vmem:[#allocation7_spill] sm:$0xff] }
  0x77   : > { %v4556_v50 = vcombine.low %v1274_v61, %v1277_v26  ;;  %v1281_v25 = vsel %vm4352_vm7, %v3148_v24, %v1280_v34  ;;  %v1282_v2 = vrot.slane %v1280_v34, 4  ;;  %v4562_v9 = vcombine.low %v5597_v3, %v4330_v11 }
  0x78   : > { %v1288_v22 = vsel %vm4352_vm7, %v3149_v0, %v1287_v35  ;;  %v1289_v44 = vrot.slane %v1287_v35, 4  ;;  %v3150_v4 = vrot.slane %v5597_v3, 9  ;;  %v1294_v41 = vrot.slane %v4330_v11, 5  ;;  %v5601_v0 = vld [vmem:[#allocation9_spill] sm:$0xff] }
  0x79   : > { %v1249_v49 = vsel %vm4352_vm7, %v1247_v55, %v1248_v23  ;;  %v1259_v7 = vrot.slane %v5598_v57, 5  ;;  %v1284_v29 = vsel %vm4352_vm7, %v1282_v2, %v1283_v31  ;;  %v1297_v24 = vrot.slane %v4341_v58, 5  ;;  %v5599_v55 = vld [vmem:[#allocation6_spill] sm:$0xff] }
  0x7a   : > { %3533 = vmatmul.mubr.msk.bf16.gmra.mxu0 %vm662_vm3, %v4498_v30  ;;  %v4578_v52 = vcombine.low %v1281_v25, %v1284_v29  ;;  %v1291_v61 = vsel %vm4352_vm7, %v1289_v44, %v1290_v27  ;;  %v1295_v11 = vsel %vm4352_vm7, %v3150_v4, %v1294_v41  ;;  %v1296_v38 = vrot.slane %v1294_v41, 4  ;;  %v5602_v27 = vld [vmem:[#allocation12_spill] sm:$0xff]  ;;  %v4665_v4 = vld [vmem:[%s3984_s7 + $0xc0] sm:$0xf]  ;;  %v220_v41 = vld [vmem:[%s3984_s7 + $0xc8] sm:$0x1] }
  0x7b   : > { %3536 = vmatprep.mubr.msk.bf16.mxu0 %vm662_vm3, %v4500_v1  ;;  %v4586_v23 = vcombine.low %v1239_v20, %v1242_v54  ;;  %v3144_v34 = vrot.slane %v5599_v55, 9  ;;  %v4589_v58 = vcombine.low %v1288_v22, %v1291_v61  ;;  %v4591_v8 = vcombine.low %v1246_v48, %v1249_v49  ;;  %v5603_v61 = vld [vmem:[#allocation10_spill] sm:$0xff] }
  0x7c   : > { %v1254_v31 = vrot.slane %v1252_v39, 4  ;;  %v1255_v36 = vrot.slane %v5600_v42, 5  ;;  %v1298_v26 = vsel %vm4352_vm7, %v1296_v38, %v1297_v24  ;;  %v3145_v35 = vrot.slane %v5601_v0, 9  ;;  %v5605_v42 = vld [vmem:[#allocation16_spill] sm:$0xff] }
  0x7d   : > { %3499 = vmatmul.mubr.msk.bf16.gmra.mxu1 %vm662_vm3, %v4490_v56  ;;  %v1261_v40 = vrot.slane %v1259_v7, 4  ;;  %v1262_v25 = vrot.slane %v5602_v27, 5  ;;  %v4598_v2 = vcombine.low %v1295_v11, %v1298_v26  ;;  %v4602_v20 = vcombine.low %v4301_v51, %v4308_v62  ;;  %v5609_v26 = vld [vmem:[#allocation8_spill] sm:$0xff] }
  0x7e   : > { %3502 = vmatprep.mubr.msk.bf16.mxu1 %vm662_vm3, %v4494_v17  ;;  %v4608_v48 = vcombine.low %v4006_v13, %v4011_v16  ;;  %v1253_v54 = vsel %vm4352_vm7, %v3144_v34, %v1252_v39  ;;  %v1256_v3 = vsel %vm4352_vm7, %v1254_v31, %v1255_v36  ;;  %v1260_v51 = vsel %vm4352_vm7, %v3145_v35, %v1259_v7  ;;  %v5604_v34 = vld [vmem:[#allocation14_spill] sm:$0xff]  ;;  %v5608_v36 = vld [vmem:[#allocation27_spill] sm:$0xff] }
  0x7f   : > { %v1263_v62 = vsel %vm4352_vm7, %v1261_v40, %v1262_v25  ;;  %v4624_v13 = vcombine.low %v1253_v54, %v1256_v3  ;;  %v4630_v39 = vcombine.low %v5599_v55, %v4051_v59  ;;  %v4636_v22 = vcombine.low %v5601_v0, %v5598_v57  ;;  %v4659_v59 = vld [vmem:[%s3984_s7 + $0xc4] sm:$0xf]  ;;  %v3276_v55 = vld [vmem:[%s5512_s1 + $0x20] sm:$0xf]  ;;  %v5611_v35 = vld [vmem:[#allocation15_spill] sm:$0xff] }
  0x80   : > { %v4626_v16 = vcombine.low %v1260_v51, %v1263_v62  ;;  %v2030_v44 = vrot.slane %v4659_v59, 5  ;;  %v3220_v49 = vrot.slane %v4665_v4, 9  ;;  %v2033_v7 = vrot.slane %v220_v41, 5  ;;  %v5610_v0 = vld [vmem:[#allocation13_spill] sm:$0xff] }
  0x81   : > { %v2250_v38 = vsel %vm711_vm0, %v4436_v46, 0  ;;  %v2044_v31 = vsel %vm711_vm0, %v4453_v19, 0  ;;  %v5606_v46 = vld [vmem:[#allocation18_spill] sm:$0xff]  ;;  %v5612_v40 = vld [vmem:[#allocation17_spill] sm:$0xff]  ;;  %v1800_v27 = vshrl.u32 %v4665_v4, 16  ;;  %v1803_v25 = vshll.u32 %v4665_v4, 16 }
  0x82   : > { %3537 = vmatmul.mubr.msk.bf16.gmra.mxu0 %vm662_vm3, %v4586_v23  ;;  %v2032_v57 = vrot.slane %v2030_v44, 4  ;;  %v2031_v29 = vsel %vm4352_vm7, %v3220_v49, %v2030_v44  ;;  %v5607_v19 = vld [vmem:[#allocation22_spill] sm:$0xff]  ;;  %v1813_v54 = vshrl.u32 %v4659_v59, 16  ;;  %v1809_v3 = vshll.u32 %v4659_v59, 16 }
  0x83   : > { %3540 = vmatprep.mubr.msk.bf16.mxu0 %vm662_vm3, %v4591_v8  ;;  %v1802_v51 = vrot.slane %v1800_v27, 4  ;;  %v1805_v62 = vrot.slane %v1803_v25, 5 }
  0x84   : > { %v2034_v24 = vsel %vm4352_vm7, %v2032_v57, %v2033_v7  ;;  %v1811_v44 = vrot.slane %v1809_v3, 5  ;;  %v1815_v49 = vrot.slane %v1813_v54, 4  ;;  %v5613_v57 = vld [vmem:[#allocation20_spill] sm:$0xff]  ;;  %v5614_v7 = vld [vmem:[#allocation25_spill] sm:$0xff]  ;;  %v3185_v3 = vcombine.low %v4665_v4, %v4659_v59 }
  0x85   : > { %3503 = vmatmul.mubr.msk.bf16.gmra.mxu1 %vm662_vm3, %v4602_v20  ;;  %v4677_v11 = vcombine.low %v2031_v29, %v2034_v24  ;;  %v1806_v29 = vor.u32 %v1805_v62, %v1802_v51  ;;  %v2690_v51 = vsel %vm711_vm0, %v3276_v55, 0 }
  0x86   : > { %3506 = vmatprep.mubr.msk.bf16.mxu1 %vm662_vm3, %v4608_v48  ;;  %v1816_v24 = vor.u32 %v1815_v49, %v1811_v44 }
  0x8a   : > { %3541 = vmatmul.mubr.msk.bf16.gmra.mxu0 %vm662_vm3, %v4624_v13 }
  0x8b   : > { %3544 = vmatprep.mubr.msk.bf16.mxu0 %vm662_vm3, %v4626_v16 }
  0x8d   : > { %3507 = vmatmul.mubr.msk.bf16.gmra.mxu1 %vm662_vm3, %v4630_v39 }
  0x8e   : > { %3510 = vmatprep.mubr.msk.bf16.mxu1 %vm662_vm3, %v4636_v22 }
  0x92   : > { %3545 = vmatmul.mubr.msk.bf16.gmra.mxu0 %vm662_vm3, %v4541_v21 }
  0x93   : > { %3548 = vmatprep.mubr.msk.bf16.mxu0 %vm662_vm3, %v4556_v50 }
  0x95   : > { %3511 = vmatmul.mubr.msk.bf16.gmra.mxu1 %vm662_vm3, %v4505_v18 }
  0x96   : > { %3514 = vmatprep.mubr.msk.bf16.mxu1 %vm662_vm3, %v4518_v6 }
  0x9a   : > { %3549 = vmatmul.mubr.msk.bf16.gmra.mxu0 %vm662_vm3, %v4578_v52 }
  0x9b   : > { %3552 = vmatprep.mubr.msk.bf16.mxu0 %vm662_vm3, %v4589_v58 }
  0x9d   : > { %3515 = vmatmul.mubr.msk.bf16.gmra.mxu1 %vm662_vm3, %v4532_v43 }
  0x9e   : > { %3518 = vmatprep.mubr.msk.bf16.mxu1 %vm662_vm3, %v4547_v28 }
  0xa2   : > { %3553 = vmatmul.mubr.msk.bf16.gmra.mxu0 %vm662_vm3, %v4598_v2 }
  0xa3   : > { %3592 = vmatprep.mubr.msk.bf16.mxu0 %vm662_vm3, %v5603_v61  ;;  %v1819_v61 = vshll.u32 %v220_v41, 16 }
  0xa5   : > { %3519 = vmatmul.mubr.msk.bf16.gmra.mxu1 %vm662_vm3, %v4562_v9  ;;  %v1821_v27 = vrot.slane %v1819_v61, 5  ;;  %v4869_v61 = vld [vmem:[%s3984_s7 + $0xd0] sm:$0xf] }
  0xa6   : > { %3558 = vmatprep.mubr.msk.bf16.mxu1 %vm662_vm3, %v4364_v45  ;;  %v3257_v45 = vld [vmem:[%s5512_s1 + $0x1c] sm:$0xf] }
  0xa7   : > { %v2478_v62 = vsel %vm711_vm0, %v3257_v45, 0 }
  0xaa   : > { %3593 = vmatmul.mubr.msk.bf16.vlgmr.msra.gmra.mxu0 %vm662_vm3, %v5604_v34 }
  0xab   : > { %3659 = vmatpush3.bf16.msra.mxu0 %v2250_v38  ;;  %3596 = vmatprep.mubr.msk.bf16.mxu0 %vm662_vm3, %v5605_v42  ;;  %v1807_v38 = vrot.slane %v1806_v29, 4 }
  0xac   : > { %3771 = vmatprep.subr.msk.bf16.mxu0 %vm711_vm0, %v3276_v55 }
  0xad   : > { %3559 = vmatmul.mubr.msk.bf16.vlgmr.msra.gmra.mxu1 %vm662_vm3, %v4391_v63  ;;  %v1812_v25 = vsel %vm4029_vm4, %v1807_v38, %v1811_v44 }
  0xae   : > { %3625 = vmatpush3.bf16.msra.mxu1 %v2044_v31  ;;  %3562 = vmatprep.mubr.msk.bf16.mxu1 %vm662_vm3, %v4482_v53  ;;  %v1817_v31 = vrot.slane %v1816_v24, 4 }
  0xaf   : > { %3770 = vmatprep.subr.msk.bf16.mxu1 %vm711_vm0, %v3257_v45 }
  0xb0   : > { %v1822_v41 = vsel %vm4029_vm4, %v1817_v31, %v1821_v27 }
  0xb1   : > { %v4759_v54 = vcombine.low %v1812_v25, %v1822_v41 }
  0xb2   : > { %3597 = vmatmul.mubr.msk.bf16.gmra.mxu0 %vm662_vm3, %v5606_v46 }
  0xb3   : > { %3600 = vmatprep.mubr.msk.bf16.mxu0 %vm662_vm3, %v5607_v19  ;;  %5615 = vst [vmem:[#allocation19_spill] sm:$0xff] %v4759_v54 }
  0xb5   : > { %3563 = vmatmul.mubr.msk.bf16.gmra.mxu1 %vm662_vm3, %v4486_v33 }
  0xb6   : > { %3566 = vmatprep.mubr.msk.bf16.mxu1 %vm662_vm3, %v4490_v56 }
  0xba   : > { %3601 = vmatmul.mubr.msk.bf16.gmra.mxu0 %vm662_vm3, %v5608_v36 }
  0xbb   : > { %3604 = vmatprep.mubr.msk.bf16.mxu0 %vm662_vm3, %v4373_v15 }
  0xbd   : > { %3567 = vmatmul.mubr.msk.bf16.gmra.mxu1 %vm662_vm3, %v4494_v17 }
  0xbe   : > { %3570 = vmatprep.mubr.msk.bf16.mxu1 %vm662_vm3, %v4602_v20 }
  0xc2   : > { %3605 = vmatmul.mubr.msk.bf16.gmra.mxu0 %vm662_vm3, %v5609_v26 }
  0xc3   : > { %3608 = vmatprep.mubr.msk.bf16.mxu0 %vm662_vm3, %v5610_v0 }
  0xc5   : > { %3571 = vmatmul.mubr.msk.bf16.gmra.mxu1 %vm662_vm3, %v4608_v48 }
  0xc6   : > { %3574 = vmatprep.mubr.msk.bf16.mxu1 %vm662_vm3, %v4630_v39 }
  0xca   : > { %3609 = vmatmul.mubr.msk.bf16.gmra.mxu0 %vm662_vm3, %v5611_v35 }
  0xcb   : > { %3612 = vmatprep.mubr.msk.bf16.mxu0 %vm662_vm3, %v5612_v40 }
  0xcd   : > { %3575 = vmatmul.mubr.msk.bf16.gmra.mxu1 %vm662_vm3, %v4636_v22 }
  0xce   : > { %3578 = vmatprep.mubr.msk.bf16.mxu1 %vm662_vm3, %v4505_v18 }
  0xd2   : > { %3613 = vmatmul.mubr.msk.bf16.gmra.mxu0 %vm662_vm3, %v5613_v57 }
  0xd3   : > { %3616 = vmatprep.mubr.msk.bf16.mxu0 %vm662_vm3, %v5614_v7 }
  0xd5   : > { %3579 = vmatmul.mubr.msk.bf16.gmra.mxu1 %vm662_vm3, %v4518_v6 }
  0xd6   : > { %3582 = vmatprep.mubr.msk.bf16.mxu1 %vm662_vm3, %v4532_v43 }
  0xda   : > { %3617 = vmatmul.mubr.msk.bf16.gmra.mxu0 %vm662_vm3, %v4347_v5 }
  0xdb   : > { %3620 = vmatprep.mubr.msk.bf16.mxu0 %vm662_vm3, %v4401_v12 }
  0xdd   : > { %3583 = vmatmul.mubr.msk.bf16.gmra.mxu1 %vm662_vm3, %v4547_v28 }
  0xde   : > { %3586 = vmatprep.mubr.msk.bf16.mxu1 %vm662_vm3, %v4562_v9 }
  0xe2   : > { %3621 = vmatmul.mubr.msk.bf16.gmra.mxu0 %vm662_vm3, %v4759_v54 }
  0xe3   : > { %3660 = vmatprep.mubr.msk.bf16.mxu0 %vm662_vm3, %v4391_v63 }
  0xe5   : > { %3587 = vmatmul.mubr.msk.bf16.gmra.mxu1 %vm662_vm3, %v3185_v3 }
  0xe6   : > { %3626 = vmatprep.mubr.msk.bf16.mxu1 %vm662_vm3, %v4398_v47 }
  0xea   : > { %3661 = vmatmul.mubr.msk.bf16.vlgmr.msra.gmra.mxu0 %vm662_vm3, %v4482_v53 }
  0xeb   : > { %3727 = vmatpush3.bf16.msra.mxu0 %v2690_v51  ;;  %3664 = vmatprep.mubr.msk.bf16.mxu0 %vm662_vm3, %v4486_v33 }
  0xed   : > { %3627 = vmatmul.mubr.msk.bf16.vlgmr.msra.gmra.mxu1 %vm662_vm3, %v4421_v37 }
  0xee   : > { %3693 = vmatpush3.bf16.msra.mxu1 %v2478_v62  ;;  %3630 = vmatprep.mubr.msk.bf16.mxu1 %vm662_vm3, %v4461_v14  ;;  %v4782_v63 = vpop.f32.mrf.mxu0 }
  0xf0   : > { %v4792_v53 = vpop.f32.mrf.mxu0 }
  0xf2   : > { %3665 = vmatmul.mubr.msk.bf16.gmra.mxu0 %vm662_vm3, %v4490_v56  ;;  %v4798_v56 = vpop.f32.mrf.mxu0 }
  0xf3   : > { %3668 = vmatprep.mubr.msk.bf16.mxu0 %vm662_vm3, %v4494_v17  ;;  %v4788_v47 = vpop.f32.mrf.mxu1 }
  0xf4   : > { %v4808_v59 = vpop.f32.mrf.mxu0 }
  0xf5   : > { %3631 = vmatmul.mubr.msk.bf16.gmra.mxu1 %vm662_vm3, %v4463_v10  ;;  %v4794_v33 = vpop.f32.mrf.mxu1 }
  0xf6   : > { %3634 = vmatprep.mubr.msk.bf16.mxu1 %vm662_vm3, %v4498_v30 }
  0xf7   : > { %v4804_v17 = vpop.f32.mrf.mxu1 }
  0xf9   : > { %v4810_v4 = vpop.f32.mrf.mxu1 }
  0xfa   : > { %3669 = vmatmul.mubr.msk.bf16.gmra.mxu0 %vm662_vm3, %v4602_v20 }
  0xfb   : > { %3672 = vmatprep.mubr.msk.bf16.mxu0 %vm662_vm3, %v4608_v48 }
  0xfd   : > { %3635 = vmatmul.mubr.msk.bf16.gmra.mxu1 %vm662_vm3, %v4500_v1 }
  0xfe   : > { %3638 = vmatprep.mubr.msk.bf16.mxu1 %vm662_vm3, %v4586_v23 }
  0xff   : > { %v4814_v20 = vpop.f32.mrf.mxu0 }
 0x101   : > { %v4824_v55 = vpop.f32.mrf.mxu0 }
 0x102   : > { %3673 = vmatmul.mubr.msk.bf16.gmra.mxu0 %vm662_vm3, %v4630_v39 }
 0x103   : > { %3676 = vmatprep.mubr.msk.bf16.mxu0 %vm662_vm3, %v4636_v22  ;;  %v4820_v48 = vpop.f32.mrf.mxu1  ;;  %v4830_v39 = vpop.f32.mrf.mxu0 }
 0x105   : > { %3639 = vmatmul.mubr.msk.bf16.gmra.mxu1 %vm662_vm3, %v4591_v8  ;;  %v4826_v45 = vpop.f32.mrf.mxu1  ;;  %v4840_v44 = vpop.f32.mrf.mxu0 }
 0x106   : > { %3642 = vmatprep.mubr.msk.bf16.mxu1 %vm662_vm3, %v4624_v13 }
 0x107   : > { %v4836_v22 = vpop.f32.mrf.mxu1 }
 0x109   : > { %v4842_v49 = vpop.f32.mrf.mxu1 }
 0x10a   : > { %3677 = vmatmul.mubr.msk.bf16.gmra.mxu0 %vm662_vm3, %v4505_v18 }
 0x10b   : > { %3680 = vmatprep.mubr.msk.bf16.mxu0 %vm662_vm3, %v4518_v6 }
 0x10d   : > { %3643 = vmatmul.mubr.msk.bf16.gmra.mxu1 %vm662_vm3, %v4626_v16 }
 0x10e   : > { %3646 = vmatprep.mubr.msk.bf16.mxu1 %vm662_vm3, %v4541_v21 }
 0x110   : > { %v4846_v18 = vpop.f32.mrf.mxu0 }
 0x112   : > { %3681 = vmatmul.mubr.msk.bf16.gmra.mxu0 %vm662_vm3, %v4532_v43  ;;  %v4856_v29 = vpop.f32.mrf.mxu0 }
 0x113   : > { %3684 = vmatprep.mubr.msk.bf16.mxu0 %vm662_vm3, %v4547_v28  ;;  %v4866_v28 = vld [vmem:[%s3984_s7 + $0xcc] sm:$0xf] }
 0x114   : > { %v4862_v43 = vpop.f32.mrf.mxu0 }
 0x115   : > { %3647 = vmatmul.mubr.msk.bf16.gmra.mxu1 %vm662_vm3, %v4556_v50  ;;  %v4852_v6 = vpop.f32.mrf.mxu1 }
 0x116   : > { %5616 = vst [vmem:[#allocation23_spill] sm:$0xff] %v4852_v6  ;;  %3650 = vmatprep.mubr.msk.bf16.mxu1 %vm662_vm3, %v4578_v52  ;;  %v4875_v31 = vpop.f32.mrf.mxu0 }
 0x117   : > { %v4858_v24 = vpop.f32.mrf.mxu1 }
 0x118   : > { %5617 = vst [vmem:[#allocation21_spill] sm:$0xff] %v4858_v24 }
 0x119   : > { %v4873_v38 = vpop.f32.mrf.mxu1 }
 0x11a   : > { %3685 = vmatmul.mubr.msk.bf16.gmra.mxu0 %vm662_vm3, %v4562_v9  ;;  %5618 = vst [vmem:[#allocation24_spill] sm:$0xff] %v4873_v38  ;;  %v3240_v9 = vcombine.low %v4866_v28, %v4869_v61 }
 0x11b   : > { %3688 = vmatprep.mubr.msk.bf16.mxu0 %vm662_vm3, %v3185_v3  ;;  %v4881_v27 = vpop.f32.mrf.mxu1 }
 0x11c   : > { %5619 = vst [vmem:[#allocation26_spill] sm:$0xff] %v4881_v27 }
 0x11d   : > { %3651 = vmatmul.mubr.msk.bf16.gmra.mxu1 %vm662_vm3, %v4589_v58 }
 0x11e   : > { %3654 = vmatprep.mubr.msk.bf16.mxu1 %vm662_vm3, %v4598_v2 }
 0x122   : > { %v4883_v25 = vpop.f32.mrf.mxu0  ;;  %3689 = vmatmul.mubr.msk.bf16.gmra.mxu0 %vm662_vm3, %v3240_v9 }
 0x123   : > { %3728 = vmatprep.mubr.msk.bf16.mxu0 %vm662_vm3, %v4421_v37 }
 0x124   : > { %v4888_v41 = vpop.f32.mrf.mxu0 }
 0x125   : > { %v4890_v3 = vpop.f32.mrf.mxu1  ;;  %3655 = vmatmul.mubr.msk.bf16.gmra.mxu1 %vm662_vm3, %v4677_v11 }
 0x126   : > { %5620 = vst [vmem:[#allocation11_spill] sm:$0xff] %v4890_v3  ;;  %v4894_v51 = vpop.f32.mrf.mxu0  ;;  %3694 = vmatprep.mubr.msk.bf16.mxu1 %vm662_vm3, %v5604_v34 }
 0x127   : > { %v4898_v62 = vpop.f32.mrf.mxu1 }
 0x128   : > { %5621 = vst [vmem:[#allocation6_spill] sm:$0xff] %v4898_v62  ;;  %v4900_v27 = vpop.f32.mrf.mxu0 }
 0x129   : > { %v4902_v9 = vpop.f32.mrf.mxu1 }
 0x12a   : > { %5622 = vst [vmem:[#allocation7_spill] sm:$0xff] %v4902_v9  ;;  %v3526_v38 = vpop.f32.mrf.mxu0  ;;  %3729 = vmatmul.mubr.msk.bf16.vlgmr.msra.gmra.mxu0 %vm662_vm3, %v4461_v14 }
 0x12b   : > { %v4906_v37 = vpop.f32.mrf.mxu1  ;;  %3732 = vmatprep.mubr.msk.bf16.mxu0 %vm662_vm3, %v4463_v10 }
 0x12c   : > { %5623 = vst [vmem:[#allocation9_spill] sm:$0xff] %v4906_v37  ;;  %v1434_v3 = vpop.f32.mrf.mxu0 }
 0x12d   : > { %v3492_v24 = vpop.f32.mrf.mxu1  ;;  %3695 = vmatmul.mubr.msk.bf16.vlgmr.msra.gmra.mxu1 %vm662_vm3, %v5605_v42 }
 0x12e   : > { %v1050_v34 = vadd.f32 %v3492_v24, %v4782_v63  ;;  %v3527_v62 = vpop.f32.mrf.mxu0  ;;  %3698 = vmatprep.mubr.msk.bf16.mxu1 %vm662_vm3, %v5606_v46 }
 0x12f   : > { %v1041_v9 = vpop.f32.mrf.mxu1 }
 0x130   : > { %v4915_v54 = vadd.f32 %v3526_v38, %v1050_v34  ;;  %v1042_v14 = vadd.f32 %v1041_v9, %v4792_v53  ;;  %v1437_v37 = vpop.f32.mrf.mxu0 }
 0x131   : > { %v3493_v6 = vpop.f32.mrf.mxu1 }
 0x132   : > { %v4918_v32 = vadd.f32 %v1434_v3, %v1042_v14  ;;  %v1053_v10 = vadd.f32 %v3493_v6, %v4798_v56  ;;  %v3530_v12 = vpop.f32.mrf.mxu0  ;;  %3733 = vmatmul.mubr.msk.bf16.gmra.mxu0 %vm662_vm3, %v4498_v30 }
 0x133   : > { %v1044_v42 = vpop.f32.mrf.mxu1  ;;  %3736 = vmatprep.mubr.msk.bf16.mxu0 %vm662_vm3, %v4500_v1 }
 0x134   : > { %v4925_v46 = vadd.f32 %v3527_v62, %v1053_v10  ;;  %v1045_v63 = vadd.f32 %v1044_v42, %v4808_v59  ;;  %v1450_v24 = vpop.f32.mrf.mxu0 }
 0x135   : > { %v3496_v53 = vpop.f32.mrf.mxu1  ;;  %3699 = vmatmul.mubr.msk.bf16.gmra.mxu1 %vm662_vm3, %v5607_v19 }
 0x136   : > { %v4930_v38 = vadd.f32 %v1437_v37, %v1045_v63  ;;  %v1066_v56 = vadd.f32 %v3496_v53, %v4814_v20  ;;  %v3531_v6 = vpop.f32.mrf.mxu0  ;;  %3702 = vmatprep.mubr.msk.bf16.mxu1 %vm662_vm3, %v5608_v36 }
 0x137   : > { %v1057_v30 = vpop.f32.mrf.mxu1 }
 0x138   : > { %v4935_v3 = vadd.f32 %v3530_v12, %v1066_v56  ;;  %v1058_v1 = vadd.f32 %v1057_v30, %v4824_v55  ;;  %v1453_v62 = vpop.f32.mrf.mxu0 }
 0x139   : > { %v3497_v59 = vpop.f32.mrf.mxu1 }
 0x13a   : > { %v4938_v9 = vadd.f32 %v1450_v24, %v1058_v1  ;;  %v1069_v34 = vadd.f32 %v3497_v59, %v4830_v39  ;;  %v3534_v19 = vpop.f32.mrf.mxu0  ;;  %3737 = vmatmul.mubr.msk.bf16.gmra.mxu0 %vm662_vm3, %v4586_v23 }
 0x13b   : > { %v1060_v20 = vpop.f32.mrf.mxu1  ;;  %3740 = vmatprep.mubr.msk.bf16.mxu0 %vm662_vm3, %v4591_v8 }
 0x13c   : > { %v4945_v36 = vadd.f32 %v3531_v6, %v1069_v34  ;;  %v1061_v12 = vadd.f32 %v1060_v20, %v4840_v44  ;;  %v1466_v37 = vpop.f32.mrf.mxu0 }
 0x13d   : > { %v3500_v55 = vpop.f32.mrf.mxu1  ;;  %3703 = vmatmul.mubr.msk.bf16.gmra.mxu1 %vm662_vm3, %v4373_v15 }
 0x13e   : > { %v4950_v14 = vadd.f32 %v1453_v62, %v1061_v12  ;;  %v1082_v39 = vadd.f32 %v3500_v55, %v4846_v18  ;;  %v3535_v10 = vpop.f32.mrf.mxu0  ;;  %3706 = vmatprep.mubr.msk.bf16.mxu1 %vm662_vm3, %v5609_v26 }
 0x13f   : > { %v1073_v23 = vpop.f32.mrf.mxu1 }
 0x140   : > { %v4955_v42 = vadd.f32 %v3534_v19, %v1082_v39  ;;  %v1074_v8 = vadd.f32 %v1073_v23, %v4856_v29  ;;  %v1469_v63 = vpop.f32.mrf.mxu0 }
 0x141   : > { %v3501_v44 = vpop.f32.mrf.mxu1 }
 0x142   : > { %v4958_v24 = vadd.f32 %v1466_v37, %v1074_v8  ;;  %v1085_v53 = vadd.f32 %v3501_v44, %v4862_v43  ;;  %v3538_v15 = vpop.f32.mrf.mxu0  ;;  %3741 = vmatmul.mubr.msk.bf16.gmra.mxu0 %vm662_vm3, %v4624_v13  ;;  %v2449_v37 = vshll.u32 %v4866_v28, 16 }
 0x143   : > { %v1076_v18 = vpop.f32.mrf.mxu1  ;;  %3744 = vmatprep.mubr.msk.bf16.mxu0 %vm662_vm3, %v4626_v16 }
 0x144   : > { %v4965_v26 = vadd.f32 %v3535_v10, %v1085_v53  ;;  %v1077_v56 = vadd.f32 %v1076_v18, %v4875_v31  ;;  %v1482_v6 = vpop.f32.mrf.mxu0  ;;  %v2451_v44 = vrot.slane %v2449_v37, 5 }
 0x145   : > { %v3504_v29 = vpop.f32.mrf.mxu1  ;;  %3707 = vmatmul.mubr.msk.bf16.gmra.mxu1 %vm662_vm3, %v5610_v0 }
 0x146   : > { %v4970_v30 = vadd.f32 %v1469_v63, %v1077_v56  ;;  %v1098_v43 = vadd.f32 %v3504_v29, %v4883_v25  ;;  %v3539_v1 = vpop.f32.mrf.mxu0  ;;  %3710 = vmatprep.mubr.msk.bf16.mxu1 %vm662_vm3, %v5611_v35 }
 0x147   : > { %v1089_v13 = vpop.f32.mrf.mxu1 }
 0x148   : > { %v4975_v62 = vadd.f32 %v3538_v15, %v1098_v43  ;;  %v1090_v16 = vadd.f32 %v1089_v13, %v4888_v41  ;;  %v1485_v59 = vpop.f32.mrf.mxu0  ;;  %v2446_v41 = vshrl.u32 %v4866_v28, 16 }
 0x149   : > { %v3505_v31 = vpop.f32.mrf.mxu1 }
 0x14a   : > { %v4978_v34 = vadd.f32 %v1482_v6, %v1090_v16  ;;  %v1101_v19 = vadd.f32 %v3505_v31, %v4894_v51  ;;  %v3542_v0 = vpop.f32.mrf.mxu0  ;;  %3745 = vmatmul.mubr.msk.bf16.gmra.mxu0 %vm662_vm3, %v4541_v21  ;;  %v2455_v51 = vshll.u32 %v4869_v61, 16  ;;  %v2459_v21 = vshrl.u32 %v4869_v61, 16 }
 0x14b   : > { %v1092_v25 = vpop.f32.mrf.mxu1  ;;  %3748 = vmatprep.mubr.msk.bf16.mxu0 %vm662_vm3, %v4556_v50 }
 0x14c   : > { %v4985_v35 = vadd.f32 %v3539_v1, %v1101_v19  ;;  %v1093_v20 = vadd.f32 %v1092_v25, %v4900_v27  ;;  %v1498_v12 = vpop.f32.mrf.mxu0  ;;  %v2457_v15 = vrot.slane %v2455_v51, 5  ;;  %v2461_v18 = vrot.slane %v2459_v21, 4 }
 0x14d   : > { %v3508_v55 = vpop.f32.mrf.mxu1  ;;  %3711 = vmatmul.mubr.msk.bf16.gmra.mxu1 %vm662_vm3, %v5612_v40  ;;  %v2448_v40 = vrot.slane %v2446_v41, 4  ;;  %v3275_v19 = vrot.slane %v4866_v28, 9 }
 0x14e   : > { %v4994_v39 = vadd.f32 %v1485_v59, %v1093_v20  ;;  %v1114_v50 = vadd.f32 %v3508_v55, %v4788_v47  ;;  %v3543_v10 = vpop.f32.mrf.mxu0  ;;  %3714 = vmatprep.mubr.msk.bf16.mxu1 %vm662_vm3, %v5613_v57  ;;  %v2676_v57 = vrot.slane %v4869_v61, 5 }
 0x14f   : > { %v1105_v27 = vpop.f32.mrf.mxu1 }
 0x150   : > { %v4999_v23 = vadd.f32 %v3542_v0, %v1114_v50  ;;  %v1106_v8 = vadd.f32 %v1105_v27, %v4794_v33  ;;  %v1501_v63 = vpop.f32.mrf.mxu0  ;;  %v223_v33 = vld [vmem:[%s3984_s7 + $0xd4] sm:$0x1]  ;;  %s3300_s7 = sshll.u32 %s3938_s16, 12  ;;  %s5471_s16 = scalar_lea.sflag [#allocation3], %s161_s29 }
 0x151   : > { %v3509_v53 = vpop.f32.mrf.mxu1  ;;  %v2465_v31 = vshll.u32 %v223_v33, 16  ;;  %v2679_v25 = vrot.slane %v223_v33, 5  ;;  %s5463_s11 = scalar_lea.hbm %s5514_s3, %s3300_s7 }
 0x152   : > { %v5002_v56 = vadd.f32 %v1498_v12, %v1106_v8  ;;  %v1117_v47 = vadd.f32 %v3509_v53, %v4804_v17  ;;  %v3546_v6 = vpop.f32.mrf.mxu0  ;;  %3749 = vmatmul.mubr.msk.bf16.gmra.mxu0 %vm662_vm3, %v4578_v52  ;;  %v2452_v17 = vor.u32 %v2451_v44, %v2448_v40 }
 0x153   : > { %v1108_v29 = vpop.f32.mrf.mxu1  ;;  %3752 = vmatprep.mubr.msk.bf16.mxu0 %vm662_vm3, %v4589_v58  ;;  %v2462_v58 = vor.u32 %v2461_v18, %v2457_v15  ;;  %v2467_v28 = vrot.slane %v2465_v31, 5 }
 0x154   : > { %v5011_v43 = vadd.f32 %v3543_v10, %v1117_v47  ;;  %v1109_v1 = vadd.f32 %v1108_v29, %v4810_v4  ;;  %v1514_v13 = vpop.f32.mrf.mxu0  ;;  %v2678_v4 = vrot.slane %v2676_v57, 4  ;;  %v2453_v37 = vrot.slane %v2452_v17, 4  ;;  %v5627_v47 = vld [vmem:[#allocation19_spill] sm:$0xff]  ;;  %v5628_v29 = vld [vmem:[#allocation21_spill] sm:$0xff]  ;;  %v5629_v17 = vld [vmem:[#allocation24_spill] sm:$0xff] }
 0x155   : > { %v3512_v16 = vpop.f32.mrf.mxu1  ;;  %3715 = vmatmul.mubr.msk.bf16.gmra.mxu1 %vm662_vm3, %v5614_v7 }
 0x156   : > { %v5016_v59 = vadd.f32 %v1501_v63, %v1109_v1  ;;  %v1130_v52 = vadd.f32 %v3512_v16, %v4820_v48  ;;  %v3547_v61 = vpop.f32.mrf.mxu0  ;;  %3718 = vmatprep.mubr.msk.bf16.mxu1 %vm662_vm3, %v4347_v5  ;;  %v2463_v5 = vrot.slane %v2462_v58, 4  ;;  %v2680_v50 = vsel %vm4352_vm7, %v2678_v4, %v2679_v25  ;;  %v5624_v63 = vld [vmem:[#allocation28_spill] sm:$0xff] }
 0x157   : > { %v1121_v0 = vpop.f32.mrf.mxu1  ;;  %v2458_v40 = vsel %vm4029_vm4, %v2453_v37, %v2457_v15 }
 0x158   : > { %v5022_v20 = vadd.f32 %v3546_v6, %v1130_v52  ;;  %v1122_v7 = vadd.f32 %v1121_v0, %v4826_v45  ;;  %v1517_v12 = vpop.f32.mrf.mxu0  ;;  %v2677_v45 = vsel %vm4352_vm7, %v3275_v19, %v2676_v57  ;;  %v2468_v60 = vsel %vm4029_vm4, %v2463_v5, %v2467_v28  ;;  %v5630_v19 = vld [vmem:[#allocation26_spill] sm:$0xff] }
 0x159   : > { %v3513_v41 = vpop.f32.mrf.mxu1  ;;  %v3258_v15 = vcombine.low %v2458_v40, %v2468_v60  ;;  %v5632_v5 = vld [vmem:[#allocation6_spill] sm:$0xff]  ;;  %v5634_v40 = vld [vmem:[#allocation9_spill] sm:$0xff] }
 0x15a   : > { %v5025_v55 = vadd.f32 %v1514_v13, %v1122_v7  ;;  %v1133_v48 = vadd.f32 %v3513_v41, %v4836_v22  ;;  %v3550_v51 = vpop.f32.mrf.mxu0  ;;  %3753 = vmatmul.mubr.msk.bf16.gmra.mxu0 %vm662_vm3, %v4598_v2 }
 0x15b   : > { %v1124_v21 = vpop.f32.mrf.mxu1  ;;  %3756 = vmatprep.mubr.msk.bf16.mxu0 %vm662_vm3, %v4677_v11  ;;  %v5626_v11 = vld [vmem:[#allocation23_spill] sm:$0xff] }
 0x15c   : > { %v5036_v10 = vadd.f32 %v3547_v61, %v1133_v48  ;;  %v1125_v22 = vadd.f32 %v1124_v21, %v4842_v49  ;;  %v1530_v27 = vpop.f32.mrf.mxu0  ;;  %v3277_v49 = vcombine.low %v2677_v45, %v2680_v50 }
 0x15d   : > { %v3516_v8 = vpop.f32.mrf.mxu1  ;;  %3719 = vmatmul.mubr.msk.bf16.gmra.mxu1 %vm662_vm3, %v5624_v63 }
 0x15e   : > { %v5043_v44 = vadd.f32 %v1517_v12, %v1125_v22  ;;  %v1146_v53 = vadd.f32 %v3516_v8, %v5626_v11  ;;  %v3551_v18 = vpop.f32.mrf.mxu0  ;;  %3722 = vmatprep.mubr.msk.bf16.mxu1 %vm662_vm3, %v5627_v47  ;;  %v5631_v12 = vld [vmem:[#allocation11_spill] sm:$0xff] }
 0x15f   : > { %v1137_v6 = vpop.f32.mrf.mxu1  ;;  %v5633_v22 = vld [vmem:[#allocation7_spill] sm:$0xff] }
 0x160   : > { %v5050_v57 = vadd.f32 %v3550_v51, %v1146_v53  ;;  %v1138_v33 = vadd.f32 %v1137_v6, %v5628_v29  ;;  %v1533_v1 = vpop.f32.mrf.mxu0 }
 0x161   : > { %v3517_v13 = vpop.f32.mrf.mxu1 }
 0x162   : > { %v5053_v16 = vadd.f32 %v1530_v27, %v1138_v33  ;;  %v1149_v52 = vadd.f32 %v3517_v13, %v5629_v17  ;;  %v3554_v61 = vpop.f32.mrf.mxu0  ;;  %3757 = vmatmul.mubr.msk.bf16.gmra.mxu0 %vm662_vm3, %v3277_v49 }
 0x163   : > { %v1140_v58 = vpop.f32.mrf.mxu1 }
 0x164   : > { %v5057_v31 = vadd.f32 %v3551_v18, %v1149_v52  ;;  %v1141_v0 = vadd.f32 %v1140_v58, %v5630_v19  ;;  %v1546_v4 = vpop.f32.mrf.mxu0 }
 0x165   : > { %v3520_v25 = vpop.f32.mrf.mxu1  ;;  %3723 = vmatmul.mubr.msk.bf16.gmra.mxu1 %vm662_vm3, %v3258_v15 }
 0x166   : > { %v5061_v7 = vadd.f32 %v1533_v1, %v1141_v0  ;;  %v1162_v41 = vadd.f32 %v3520_v25, %v5631_v12  ;;  %v3555_v37 = vpop.f32.mrf.mxu0 }
 0x167   : > { %v1153_v48 = vpop.f32.mrf.mxu1 }
 0x168   : > { %v5064_v51 = vadd.f32 %v3554_v61, %v1162_v41  ;;  %v1154_v28 = vadd.f32 %v1153_v48, %v5632_v5  ;;  %v1549_v21 = vpop.f32.mrf.mxu0 }
 0x169   : > { %v3521_v45 = vpop.f32.mrf.mxu1 }
 0x16a   : > { %v5067_v50 = vadd.f32 %v1546_v4, %v1154_v28  ;;  %v1165_v27 = vadd.f32 %v3521_v45, %v5633_v22  ;;  %v3594_v8 = vpop.f32.mrf.mxu0 }
 0x16b   : > { %v1156_v63 = vpop.f32.mrf.mxu1 }
 0x16c   : > { %v5070_v2 = vadd.f32 %v3555_v37, %v1165_v27  ;;  %v1157_v11 = vadd.f32 %v1156_v63, %v5634_v40  ;;  %v1868_v53 = vpop.f32.mrf.mxu0 }
 0x16d   : > { %v3560_v18 = vpop.f32.mrf.mxu1 }
 0x16e   : > { %v5073_v47 = vadd.f32 %v1549_v21, %v1157_v11  ;;  %v1769_v60 = vadd.f32 %v3560_v18, %v4915_v54  ;;  %v3595_v49 = vpop.f32.mrf.mxu0 }
 0x16f   : > { %v1640_v6 = vpop.f32.mrf.mxu1 }
 0x170   : > { %v5076_v29 = vadd.f32 %v3594_v8, %v1769_v60  ;;  %v1767_v33 = vadd.f32 %v1640_v6, %v4918_v32  ;;  %v1871_v1 = vpop.f32.mrf.mxu0 }
 0x171   : > { %v3561_v13 = vpop.f32.mrf.mxu1 }
 0x172   : > { %v5079_v15 = vadd.f32 %v1868_v53, %v1767_v33  ;;  %v1770_v17 = vadd.f32 %v3561_v13, %v4925_v46  ;;  %v3598_v52 = vpop.f32.mrf.mxu0 }
 0x173   : > { %v1643_v61 = vpop.f32.mrf.mxu1 }
 0x174   : > { %v5082_v58 = vadd.f32 %v3595_v49, %v1770_v17  ;;  %v1768_v19 = vadd.f32 %v1643_v61, %v4930_v38  ;;  %v1884_v0 = vpop.f32.mrf.mxu0 }
 0x175   : > { %v3564_v54 = vpop.f32.mrf.mxu1 }
 0x176   : > { %v5085_v4 = vadd.f32 %v1871_v1, %v1768_v19  ;;  %v1773_v25 = vadd.f32 %v3564_v54, %v4935_v3  ;;  %v3599_v12 = vpop.f32.mrf.mxu0 }
 0x177   : > { %v1656_v32 = vpop.f32.mrf.mxu1 }
 0x178   : > { %v5088_v41 = vadd.f32 %v3598_v52, %v1773_v25  ;;  %v1771_v37 = vadd.f32 %v1656_v32, %v4938_v9  ;;  %v1887_v48 = vpop.f32.mrf.mxu0 }
 0x179   : > { %v3565_v46 = vpop.f32.mrf.mxu1 }
 0x17a   : > { %v5091_v5 = vadd.f32 %v1884_v0, %v1771_v37  ;;  %v1774_v28 = vadd.f32 %v3565_v46, %v4945_v36  ;;  %v3602_v21 = vpop.f32.mrf.mxu0 }
 0x17b   : > { %v1659_v38 = vpop.f32.mrf.mxu1 }
 0x17c   : > { %v5094_v45 = vadd.f32 %v3599_v12, %v1774_v28  ;;  %v1772_v22 = vadd.f32 %v1659_v38, %v4950_v14  ;;  %v1900_v27 = vpop.f32.mrf.mxu0 }
 0x17d   : > { %v3568_v3 = vpop.f32.mrf.mxu1 }
 0x17e   : > { %v5097_v8 = vadd.f32 %v1887_v48, %v1772_v22  ;;  %v1777_v63 = vadd.f32 %v3568_v3, %v4955_v42  ;;  %v3603_v40 = vpop.f32.mrf.mxu0 }
 0x17f   : > { %v1672_v9 = vpop.f32.mrf.mxu1 }
 0x180   : > { %v5100_v11 = vadd.f32 %v3602_v21, %v1777_v63  ;;  %v1775_v53 = vadd.f32 %v1672_v9, %v4958_v24  ;;  %v1903_v18 = vpop.f32.mrf.mxu0 }
 0x181   : > { %v3569_v36 = vpop.f32.mrf.mxu1 }
 0x182   : > { %v5103_v60 = vadd.f32 %v1900_v27, %v1775_v53  ;;  %v1778_v49 = vadd.f32 %v3569_v36, %v4965_v26  ;;  %v3606_v6 = vpop.f32.mrf.mxu0 }
 0x183   : > { %v1675_v14 = vpop.f32.mrf.mxu1 }
 0x184   : > { %v5106_v33 = vadd.f32 %v3603_v40, %v1778_v49  ;;  %v1776_v1 = vadd.f32 %v1675_v14, %v4970_v30  ;;  %v1916_v13 = vpop.f32.mrf.mxu0 }
 0x185   : > { %v3572_v42 = vpop.f32.mrf.mxu1 }
 0x186   : > { %v5109_v17 = vadd.f32 %v1903_v18, %v1776_v1  ;;  %v1781_v52 = vadd.f32 %v3572_v42, %v4975_v62  ;;  %v3607_v61 = vpop.f32.mrf.mxu0 }
 0x187   : > { %v1688_v24 = vpop.f32.mrf.mxu1 }
 0x188   : > { %v5112_v19 = vadd.f32 %v3606_v6, %v1781_v52  ;;  %v1779_v0 = vadd.f32 %v1688_v24, %v4978_v34  ;;  %v1919_v54 = vpop.f32.mrf.mxu0 }
 0x189   : > { %v3573_v26 = vpop.f32.mrf.mxu1 }
 0x18a   : > { %v5115_v25 = vadd.f32 %v1916_v13, %v1779_v0  ;;  %v1782_v12 = vadd.f32 %v3573_v26, %v4985_v35  ;;  %v3610_v32 = vpop.f32.mrf.mxu0 }
 0x18b   : > { %v1691_v30 = vpop.f32.mrf.mxu1 }
 0x18c   : > { %v5118_v37 = vadd.f32 %v3607_v61, %v1782_v12  ;;  %v1780_v48 = vadd.f32 %v1691_v30, %v4994_v39  ;;  %v1932_v46 = vpop.f32.mrf.mxu0 }
 0x18d   : > { %v3576_v62 = vpop.f32.mrf.mxu1 }
 0x18e   : > { %v5121_v28 = vadd.f32 %v1919_v54, %v1780_v48  ;;  %v1785_v21 = vadd.f32 %v3576_v62, %v4999_v23  ;;  %v3611_v38 = vpop.f32.mrf.mxu0 }
 0x18f   : > { %v1704_v34 = vpop.f32.mrf.mxu1 }
 0x190   : > { %v5124_v22 = vadd.f32 %v3610_v32, %v1785_v21  ;;  %v1783_v27 = vadd.f32 %v1704_v34, %v5002_v56  ;;  %v1935_v3 = vpop.f32.mrf.mxu0 }
 0x191   : > { %v3577_v35 = vpop.f32.mrf.mxu1 }
 0x192   : > { %v5127_v63 = vadd.f32 %v1932_v46, %v1783_v27  ;;  %v1786_v40 = vadd.f32 %v3577_v35, %v5011_v43  ;;  %v3614_v9 = vpop.f32.mrf.mxu0 }
 0x193   : > { %v1707_v39 = vpop.f32.mrf.mxu1 }
 0x194   : > { %v5130_v53 = vadd.f32 %v3611_v38, %v1786_v40  ;;  %v1784_v18 = vadd.f32 %v1707_v39, %v5016_v59  ;;  %v1948_v36 = vpop.f32.mrf.mxu0 }
 0x195   : > { %v3580_v23 = vpop.f32.mrf.mxu1 }
 0x196   : > { %5635 = vst [vmem:[#allocation12_spill] sm:$0xff] %v5130_v53  ;;  %v5133_v49 = vadd.f32 %v1935_v3, %v1784_v18  ;;  %v1789_v6 = vadd.f32 %v3580_v23, %v5022_v20  ;;  %v3615_v14 = vpop.f32.mrf.mxu0 }
 0x197   : > { %v1720_v56 = vpop.f32.mrf.mxu1 }
 0x198   : > { %5636 = vst [vmem:[#allocation10_spill] sm:$0xff] %v5133_v49  ;;  %v5136_v1 = vadd.f32 %v3614_v9, %v1789_v6  ;;  %v1787_v13 = vadd.f32 %v1720_v56, %v5025_v55  ;;  %v1951_v42 = vpop.f32.mrf.mxu0 }
 0x199   : > { %v3581_v43 = vpop.f32.mrf.mxu1 }
 0x19a   : > { %5637 = vst [vmem:[#allocation14_spill] sm:$0xff] %v5136_v1  ;;  %v5139_v52 = vadd.f32 %v1948_v36, %v1787_v13  ;;  %v1790_v61 = vadd.f32 %v3581_v43, %v5036_v10  ;;  %v3618_v24 = vpop.f32.mrf.mxu0 }
 0x19b   : > { %v1723_v59 = vpop.f32.mrf.mxu1 }
 0x19c   : > { %5638 = vst [vmem:[#allocation16_spill] sm:$0xff] %v5139_v52  ;;  %v5142_v0 = vadd.f32 %v3615_v14, %v1790_v61  ;;  %v1788_v54 = vadd.f32 %v1723_v59, %v5043_v44  ;;  %v1964_v26 = vpop.f32.mrf.mxu0 }
 0x19d   : > { %v3584_v20 = vpop.f32.mrf.mxu1 }
 0x19e   : > { %5639 = vst [vmem:[#allocation18_spill] sm:$0xff] %v5142_v0  ;;  %v5145_v12 = vadd.f32 %v1951_v42, %v1788_v54  ;;  %v1793_v32 = vadd.f32 %v3584_v20, %v5050_v57  ;;  %v3619_v30 = vpop.f32.mrf.mxu0 }
 0x19f   : > { %v1736_v55 = vpop.f32.mrf.mxu1 }
 0x1a0   : > { %5640 = vst [vmem:[#allocation22_spill] sm:$0xff] %v5145_v12  ;;  %v5148_v48 = vadd.f32 %v3618_v24, %v1793_v32  ;;  %v1791_v46 = vadd.f32 %v1736_v55, %v5053_v16  ;;  %v1967_v62 = vpop.f32.mrf.mxu0 }
 0x1a1   : > { %v3585_v10 = vpop.f32.mrf.mxu1 }
 0x1a2   : > { %5641 = vst [vmem:[#allocation27_spill] sm:$0xff] %v5148_v48  ;;  %v5151_v21 = vadd.f32 %v1964_v26, %v1791_v46  ;;  %v1794_v38 = vadd.f32 %v3585_v10, %v5057_v31  ;;  %v3622_v34 = vpop.f32.mrf.mxu0 }
 0x1a3   : > { %v1739_v44 = vpop.f32.mrf.mxu1 }
 0x1a4   : > { %5642 = vst [vmem:[#allocation8_spill] sm:$0xff] %v5151_v21  ;;  %v5154_v27 = vadd.f32 %v3619_v30, %v1794_v38  ;;  %v1792_v3 = vadd.f32 %v1739_v44, %v5061_v7  ;;  %v1980_v35 = vpop.f32.mrf.mxu0 }
 0x1a5   : > { %v3588_v57 = vpop.f32.mrf.mxu1 }
 0x1a6   : > { %5643 = vst [vmem:[#allocation13_spill] sm:$0xff] %v5154_v27  ;;  %v5157_v40 = vadd.f32 %v1967_v62, %v1792_v3  ;;  %v1797_v9 = vadd.f32 %v3588_v57, %v5064_v51  ;;  %v3623_v39 = vpop.f32.mrf.mxu0 }
 0x1a7   : > { %v1752_v16 = vpop.f32.mrf.mxu1 }
 0x1a8   : > { %5644 = vst [vmem:[#allocation15_spill] sm:$0xff] %v5157_v40  ;;  %v5160_v18 = vadd.f32 %v3622_v34, %v1797_v9  ;;  %v1795_v36 = vadd.f32 %v1752_v16, %v5067_v50  ;;  %v1983_v23 = vpop.f32.mrf.mxu0 }
 0x1a9   : > { %v3589_v31 = vpop.f32.mrf.mxu1 }
 0x1aa   : > { %5645 = vst [vmem:[#allocation17_spill] sm:$0xff] %v5160_v18  ;;  %v5163_v6 = vadd.f32 %v1980_v35, %v1795_v36  ;;  %v1798_v14 = vadd.f32 %v3589_v31, %v5070_v2  ;;  %v5166_v56 = vpop.f32.mrf.mxu0 }
 0x1ab   : > { %v1755_v7 = vpop.f32.mrf.mxu1 }
 0x1ac   : > { %5646 = vst [vmem:[#allocation20_spill] sm:$0xff] %v5163_v6  ;;  %v5168_v13 = vadd.f32 %v3623_v39, %v1798_v14  ;;  %v1796_v42 = vadd.f32 %v1755_v7, %v5073_v47  ;;  %v5171_v51 = vpop.f32.mrf.mxu0 }
 0x1ad   : > { %v3628_v43 = vpop.f32.mrf.mxu1 }
 0x1ae   : > { %5647 = vst [vmem:[#allocation25_spill] sm:$0xff] %v5168_v13  ;;  %v5173_v61 = vadd.f32 %v1983_v23, %v1796_v42  ;;  %v5175_v24 = vpop.f32.mrf.mxu0 }
 0x1af   : > { %v2080_v50 = vpop.f32.mrf.mxu1 }
 0x1b0   : > { %5648 = vst [vmem:[#allocation28_spill] sm:$0xff] %v5173_v61  ;;  %v5177_v59 = vpop.f32.mrf.mxu0 }
 0x1b1   : > { %v3629_v54 = vpop.f32.mrf.mxu1 }
 0x1b2   : > { %v5179_v26 = vpop.f32.mrf.mxu0 }
 0x1b3   : > { %v5181_v2 = vpop.f32.mrf.mxu1 }
 0x1b4   : > { %v5183_v20 = vpop.f32.mrf.mxu0 }
 0x1b5   : > { %v5185_v32 = vpop.f32.mrf.mxu1 }
 0x1b6   : > { %v5187_v47 = vpop.f32.mrf.mxu0 }
 0x1b7   : > { %v5189_v30 = vpop.f32.mrf.mxu1 }
 0x1b8   : > { %v5191_v55 = vpop.f32.mrf.mxu0 }
 0x1b9   : > { %v5193_v46 = vpop.f32.mrf.mxu1 }
 0x1ba   : > { %v5195_v62 = vpop.f32.mrf.mxu0 }
 0x1bb   : > { %v5197_v10 = vpop.f32.mrf.mxu1 }
 0x1bc   : > { %v5199_v38 = vpop.f32.mrf.mxu0 }
 0x1bd   : > { %v5201_v34 = vpop.f32.mrf.mxu1 }
 0x1be   : > { %v5203_v44 = vpop.f32.mrf.mxu0 }
 0x1bf   : > { %v5205_v3 = vpop.f32.mrf.mxu1 }
 0x1c0   : > { %v5207_v35 = vpop.f32.mrf.mxu0 }
 0x1c1   : > { %v5209_v57 = vpop.f32.mrf.mxu1 }
 0x1c2   : > { %v5211_v9 = vpop.f32.mrf.mxu0 }
 0x1c3   : > { %v5213_v39 = vpop.f32.mrf.mxu1 }
 0x1c4   : > { %v5215_v16 = vpop.f32.mrf.mxu0 }
 0x1c5   : > { %v5217_v36 = vpop.f32.mrf.mxu1 }
 0x1c6   : > { %v5219_v23 = vpop.f32.mrf.mxu0 }
 0x1c7   : > { %v5221_v31 = vpop.f32.mrf.mxu1 }
 0x1c8   : > { %v5223_v14 = vpop.f32.mrf.mxu0 }
 0x1c9   : > { %v5225_v7 = vpop.f32.mrf.mxu1 }
 0x1ca   : > { %v5227_v42 = vpop.f32.mrf.mxu0 }
 0x1cb   : > { %v5229_v61 = vpop.f32.mrf.mxu1 }
 0x1cc   : > { %v5231_v13 = vpop.f32.mrf.mxu0 }
 0x1cd   : > { %5649 = vst [vmem:[#allocation5_spill] sm:$0xff] %v5231_v13  ;;  %v5233_v6 = vpop.f32.mrf.mxu1 }
 0x1ce   : > { %v5235_v18 = vpop.f32.mrf.mxu0 }
 0x1cf   : > { %5650 = vst [vmem:[#allocation23_spill] sm:$0xff] %v5235_v18  ;;  %v5237_v40 = vpop.f32.mrf.mxu1 }
 0x1d0   : > { %v5239_v27 = vpop.f32.mrf.mxu0 }
 0x1d1   : > { %5651 = vst [vmem:[#allocation19_spill] sm:$0xff] %v5239_v27  ;;  %v5241_v21 = vpop.f32.mrf.mxu1 }
 0x1d2   : > { %5652 = vst [vmem:[#allocation21_spill] sm:$0xff] %v5241_v21  ;;  %v5243_v48 = vpop.f32.mrf.mxu0 }
 0x1d3   : > { %5653 = vst [vmem:[#allocation24_spill] sm:$0xff] %v5243_v48  ;;  %v5245_v12 = vpop.f32.mrf.mxu1 }
 0x1d4   : > { %5654 = vst [vmem:[#allocation26_spill] sm:$0xff] %v5245_v12  ;;  %v5247_v0 = vpop.f32.mrf.mxu0 }
 0x1d5   : > { %5655 = vst [vmem:[#allocation11_spill] sm:$0xff] %v5247_v0  ;;  %v5249_v52 = vpop.f32.mrf.mxu1 }
 0x1d6   : > { %5656 = vst [vmem:[#allocation6_spill] sm:$0xff] %v5249_v52  ;;  %v5251_v1 = vpop.f32.mrf.mxu0 }
 0x1d7   : > { %5657 = vst [vmem:[#allocation7_spill] sm:$0xff] %v5251_v1  ;;  %v5253_v49 = vpop.f32.mrf.mxu1 }
 0x1d8   : > { %5658 = vst [vmem:[#allocation9_spill] sm:$0xff] %v5253_v49  ;;  %v5255_v13 = vpop.f32.mrf.mxu0 }
 0x1d9   : > { %5659 = vst [vmem:[#allocation29_spill] sm:$0xff] %v5255_v13  ;;  %v5257_v18 = vpop.f32.mrf.mxu1 }
 0x1da   : > { %5660 = vst [vmem:[#allocation30_spill] sm:$0xff] %v5257_v18  ;;  %v5259_v53 = vpop.f32.mrf.mxu0 }
 0x1db   : > { %5661 = vst [vmem:[#allocation31_spill] sm:$0xff] %v5259_v53  ;;  %v5261_v27 = vpop.f32.mrf.mxu1 }
 0x1dc   : > { %5662 = vst [vmem:[#allocation32_spill] sm:$0xff] %v5261_v27  ;;  %v5263_v21 = vpop.f32.mrf.mxu0 }
 0x1dd   : > { %5663 = vst [vmem:[#allocation33_spill] sm:$0xff] %v5263_v21  ;;  %v5265_v48 = vpop.f32.mrf.mxu1 }
 0x1de   : > { %5664 = vst [vmem:[#allocation34_spill] sm:$0xff] %v5265_v48  ;;  %v5267_v12 = vpop.f32.mrf.mxu0 }
 0x1df   : > { %5665 = vst [vmem:[#allocation35_spill] sm:$0xff] %v5267_v12  ;;  %v5269_v0 = vpop.f32.mrf.mxu1  ;;  %v2209_v12 = vadd.f32 %v3628_v43, %v5076_v29  ;;  %v2208_v29 = vadd.f32 %v5181_v2, %v5085_v4  ;;  %v2211_v4 = vadd.f32 %v5189_v30, %v5091_v5 }
 0x1e0   : > { %5666 = vst [vmem:[#allocation36_spill] sm:$0xff] %v5269_v0  ;;  %v5271_v52 = vpop.f32.mrf.mxu0 }
 0x1e1   : > { %5667 = vst [vmem:[#allocation37_spill] sm:$0xff] %v5271_v52  ;;  %v5273_v1 = vpop.f32.mrf.mxu1  ;;  %v2417_v30 = vadd.f32 %v5183_v20, %v2211_v4  ;;  %v2217_v20 = vadd.f32 %v5201_v34, %v5100_v11 }
 0x1e2   : > { %5668 = vst [vmem:[#allocation38_spill] sm:$0xff] %v5273_v1  ;;  %v5275_v49 = vpop.f32.mrf.mxu0  ;;  %v2207_v1 = vadd.f32 %v2080_v50, %v5079_v15  ;;  %v2213_v15 = vadd.f32 %v5185_v32, %v5088_v41  ;;  %v5306_v50 = vld [vmem:[%s5513_s2] ss:$0 sm:$0xff] }
 0x1e3   : > { %5669 = vst [vmem:[#allocation39_spill] sm:$0xff] %v5275_v49  ;;  %v5277_v13 = vpop.f32.mrf.mxu1 }
 0x1e4   : > { %5670 = vst [vmem:[#allocation40_spill] sm:$0xff] %v5277_v13  ;;  %v5279_v53 = vpop.f32.mrf.mxu0 }
 0x1e5   : > { %5671 = vst [vmem:[#allocation41_spill] sm:$0xff] %v5279_v53  ;;  %v5281_v27 = vpop.f32.mrf.mxu1  ;;  %v2415_v53 = vadd.f32 %v5166_v56, %v2209_v12 }
 0x1e6   : > { %5672 = vst [vmem:[#allocation42_spill] sm:$0xff] %v5281_v27  ;;  %v5283_v21 = vpop.f32.mrf.mxu0  ;;  %v2210_v27 = vadd.f32 %v3629_v54, %v5082_v58 }
 0x1e7   : > { %5673 = vst [vmem:[#allocation43_spill] sm:$0xff] %v5283_v21  ;;  %v5285_v48 = vpop.f32.mrf.mxu1 }
 0x1e8   : > { %5674 = vst [vmem:[#allocation44_spill] sm:$0xff] %v5285_v48  ;;  %v5288_v0 = vpop.f32.mrf.mxu0  ;;  %v2413_v48 = vadd.f32 %v5171_v51, %v2207_v1  ;;  %v2416_v58 = vadd.f32 %v5175_v24, %v2210_v27  ;;  %v2214_v27 = vadd.f32 %v5193_v46, %v5094_v45 }
 0x1e9   : > { %5675 = vst [vmem:[#allocation45_spill] sm:$0xff] %v5288_v0  ;;  %v5290_v52 = vpop.f32.mrf.mxu1 }
 0x1ea   : > { %v3730_v49 = vpop.f32.mrf.mxu0 }
 0x1eb   : > { %v5293_v18 = vpop.f32.mrf.mxu1 }
 0x1ec   : > { %5676 = vst [vmem:[#allocation46_spill] sm:$0xff] %v5293_v18  ;;  %v2726_v13 = vpop.f32.mrf.mxu0  ;;  %v2419_v18 = vadd.f32 %v5179_v26, %v2213_v15  ;;  %v2420_v15 = vadd.f32 %v5187_v47, %v2214_v27 }
 0x1ed   : > { %v3696_v21 = vpop.f32.mrf.mxu1 }
 0x1ee   : > { %v2643_v43 = vadd.f32 %v3696_v21, %v2415_v53  ;;  %v3731_v0 = vpop.f32.mrf.mxu0  ;;  %v2414_v21 = vadd.f32 %v5177_v59, %v2208_v29  ;;  %v2212_v59 = vadd.f32 %v5197_v10, %v5097_v8 }
 0x1ef   : > { %v2514_v12 = vpop.f32.mrf.mxu1 }
 0x1f0   : > { %v2855_v56 = vadd.f32 %v3730_v49, %v2643_v43  ;;  %v2641_v1 = vadd.f32 %v2514_v12, %v2413_v48  ;;  %v2729_v51 = vpop.f32.mrf.mxu0 }
 0x1f1   : > { %v3697_v53 = vpop.f32.mrf.mxu1 }
 0x1f2   : > { %v2894_v41 = vadd.f32 %v5306_v50, %v2855_v56  ;;  %v2853_v54 = vadd.f32 %v2726_v13, %v2641_v1  ;;  %v2644_v2 = vadd.f32 %v3697_v53, %v2416_v58  ;;  %v3734_v32 = vpop.f32.mrf.mxu0  ;;  %v2418_v53 = vadd.f32 %v5191_v55, %v2212_v59 }
 0x1f3   : > { %v2517_v24 = vpop.f32.mrf.mxu1  ;;  %v2221_v59 = vadd.f32 %v5217_v36, %v5112_v19 }
 0x1f4   : > { %v2926_v49 = vmax.f32 %v2894_v41, 0.0  ;;  %v2892_v48 = vadd.f32 %v5306_v50, %v2853_v54  ;;  %v2856_v43 = vadd.f32 %v3731_v0, %v2644_v2  ;;  %v2642_v12 = vadd.f32 %v2517_v24, %v2414_v21  ;;  %v2742_v5 = vpop.f32.mrf.mxu0 }
 0x1f5   : > { %v3700_v13 = vpop.f32.mrf.mxu1  ;;  %v2423_v54 = vadd.f32 %v5195_v62, %v2217_v20  ;;  %v2218_v2 = vadd.f32 %v5209_v57, %v5106_v33 }
 0x1f6   : > { %2958 = vst [vmem:[%s5322_s6 + $0x10] sm:$0xff] %v2926_v49  ;;  %v2924_v26 = vmax.f32 %v2892_v48, 0.0  ;;  %v2895_v45 = vadd.f32 %v5306_v50, %v2856_v43  ;;  %v2854_v46 = vadd.f32 %v2729_v51, %v2642_v12  ;;  %v2647_v29 = vadd.f32 %v3700_v13, %v2419_v18  ;;  %v3735_v0 = vpop.f32.mrf.mxu0 }
 0x1f7   : > { %v2530_v58 = vpop.f32.mrf.mxu1  ;;  %v2215_v18 = vadd.f32 %v5205_v3, %v5103_v60  ;;  %v2216_v48 = vadd.f32 %v5213_v39, %v5109_v17 }
 0x1f8   : > { %2956 = vst [vmem:[%s5322_s6] sm:$0xff] %v2924_v26  ;;  %v2927_v8 = vmax.f32 %v2895_v45, 0.0  ;;  %v2893_v10 = vadd.f32 %v5306_v50, %v2854_v46  ;;  %v2859_v56 = vadd.f32 %v3734_v32, %v2647_v29  ;;  %v2645_v1 = vadd.f32 %v2530_v58, %v2417_v30  ;;  %v2745_v4 = vpop.f32.mrf.mxu0 }
 0x1f9   : > { %v3701_v51 = vpop.f32.mrf.mxu1  ;;  %v2421_v49 = vadd.f32 %v5199_v38, %v2215_v18  ;;  %v2424_v30 = vadd.f32 %v5203_v44, %v2218_v2  ;;  %v2422_v46 = vadd.f32 %v5207_v35, %v2216_v48  ;;  %v2219_v29 = vadd.f32 %v5221_v31, %v5115_v25 }
 0x1fa   : > { %2959 = vst [vmem:[%s5322_s6 + $0x18] sm:$0xff] %v2927_v8  ;;  %v2925_v47 = vmax.f32 %v2893_v10, 0.0  ;;  %v2898_v21 = vadd.f32 %v5306_v50, %v2859_v56  ;;  %v2857_v11 = vadd.f32 %v2742_v5, %v2645_v1  ;;  %v2648_v34 = vadd.f32 %v3701_v51, %v2420_v15  ;;  %v3738_v41 = vpop.f32.mrf.mxu0 }
 0x1fb   : > { %v2533_v32 = vpop.f32.mrf.mxu1  ;;  %v2427_v58 = vadd.f32 %v5211_v9, %v2221_v59  ;;  %v2222_v8 = vadd.f32 %v5225_v7, %v5118_v37 }
 0x1fc   : > { %2957 = vst [vmem:[%s5322_s6 + $0x8] sm:$0xff] %v2925_v47  ;;  %v2930_v55 = vmax.f32 %v2898_v21, 0.0  ;;  %v2896_v27 = vadd.f32 %v5306_v50, %v2857_v11  ;;  %v2860_v60 = vadd.f32 %v3735_v0, %v2648_v34  ;;  %v2646_v3 = vadd.f32 %v2533_v32, %v2418_v53  ;;  %v2758_v24 = vpop.f32.mrf.mxu0 }
 0x1fd   : > { %v3704_v43 = vpop.f32.mrf.mxu1  ;;  %v2220_v53 = vadd.f32 %v5229_v61, %v5121_v28  ;;  %v2428_v21 = vadd.f32 %v5219_v23, %v2222_v8  ;;  %v2225_v11 = vadd.f32 %v5233_v6, %v5124_v22  ;;  %v2223_v32 = vadd.f32 %v5237_v40, %v5127_v63 }
 0x1fe   : > { %2962 = vst [vmem:[%s5322_s6 + $0x30] sm:$0xff] %v2930_v55  ;;  %v2928_v62 = vmax.f32 %v2896_v27, 0.0  ;;  %v2899_v12 = vadd.f32 %v5306_v50, %v2860_v60  ;;  %v2858_v33 = vadd.f32 %v2745_v4, %v2646_v3  ;;  %v2651_v57 = vadd.f32 %v3704_v43, %v2423_v54  ;;  %v3739_v5 = vpop.f32.mrf.mxu0 }
 0x1ff   : > { %v2546_v13 = vpop.f32.mrf.mxu1  ;;  %v2425_v4 = vadd.f32 %v5215_v16, %v2219_v29  ;;  %v2426_v2 = vadd.f32 %v5223_v14, %v2220_v53  ;;  %v2431_v3 = vadd.f32 %v5227_v42, %v2225_v11  ;;  %v5683_v29 = vld [vmem:[#allocation14_spill] sm:$0xff] }
 0x200   : > { %2960 = vst [vmem:[%s5322_s6 + $0x20] sm:$0xff] %v2928_v62  ;;  %v2931_v38 = vmax.f32 %v2899_v12, 0.0  ;;  %v2897_v26 = vadd.f32 %v5306_v50, %v2858_v33  ;;  %v2863_v17 = vadd.f32 %v3738_v41, %v2651_v57  ;;  %v2649_v39 = vadd.f32 %v2546_v13, %v2421_v49  ;;  %v2761_v45 = vpop.f32.mrf.mxu0  ;;  %v5678_v49 = vld [vmem:[#allocation21_spill] sm:$0xff] }
 0x201   : > { %v3705_v0 = vpop.f32.mrf.mxu1  ;;  %v5679_v33 = vld [vmem:[#allocation5_spill] sm:$0xff] }
 0x202   : > { %2963 = vst [vmem:[%s5322_s6 + $0x38] sm:$0xff] %v2931_v38  ;;  %v2929_v44 = vmax.f32 %v2897_v26, 0.0  ;;  %v2902_v15 = vadd.f32 %v5306_v50, %v2863_v17  ;;  %v2861_v19 = vadd.f32 %v2758_v24, %v2649_v39  ;;  %v2652_v36 = vadd.f32 %v3705_v0, %v2424_v30  ;;  %v3742_v20 = vpop.f32.mrf.mxu0  ;;  %v5677_v24 = vld [vmem:[#allocation12_spill] sm:$0xff]  ;;  %v5681_v30 = vld [vmem:[#allocation26_spill] sm:$0xff] }
 0x203   : > { %v2549_v10 = vpop.f32.mrf.mxu1  ;;  %v2226_v48 = vadd.f32 %v5678_v49, %v5677_v24  ;;  %v2429_v57 = vadd.f32 %v5679_v33, %v2223_v32  ;;  %v5684_v0 = vld [vmem:[#allocation6_spill] sm:$0xff] }
 0x204   : > { %2961 = vst [vmem:[%s5322_s6 + $0x28] sm:$0xff] %v2929_v44  ;;  %v2934_v35 = vmax.f32 %v2902_v15, 0.0  ;;  %v2900_v56 = vadd.f32 %v5306_v50, %v2861_v19  ;;  %v2864_v25 = vadd.f32 %v3739_v5, %v2652_v36  ;;  %v2650_v31 = vadd.f32 %v2549_v10, %v2422_v46  ;;  %v2774_v1 = vpop.f32.mrf.mxu0  ;;  %v5680_v5 = vld [vmem:[#allocation10_spill] sm:$0xff]  ;;  %v5685_v10 = vld [vmem:[#allocation19_spill] sm:$0xff] }
 0x205   : > { %v3708_v18 = vpop.f32.mrf.mxu1  ;;  %v2224_v59 = vadd.f32 %v5681_v30, %v5680_v5  ;;  %v2229_v44 = vadd.f32 %v5684_v0, %v5683_v29 }
 0x206   : > { %2966 = vst [vmem:[%s5322_s6 + $0x50] sm:$0xff] %v2934_v35  ;;  %v2932_v9 = vmax.f32 %v2900_v56, 0.0  ;;  %v2903_v51 = vadd.f32 %v5306_v50, %v2864_v25  ;;  %v2862_v37 = vadd.f32 %v2761_v45, %v2650_v31  ;;  %v2655_v7 = vadd.f32 %v3708_v18, %v2427_v58  ;;  %v3743_v47 = vpop.f32.mrf.mxu0  ;;  %v5682_v45 = vld [vmem:[#allocation23_spill] sm:$0xff]  ;;  %v5686_v56 = vld [vmem:[#allocation16_spill] sm:$0xff]  ;;  %v5687_v25 = vld [vmem:[#allocation9_spill] sm:$0xff] }
 0x207   : > { %v2562_v34 = vpop.f32.mrf.mxu1  ;;  %v2432_v46 = vadd.f32 %v5682_v45, %v2226_v48  ;;  %v2430_v35 = vadd.f32 %v5685_v10, %v2224_v59  ;;  %v2227_v31 = vadd.f32 %v5687_v25, %v5686_v56  ;;  %v5694_v48 = vld [vmem:[#allocation7_spill] sm:$0xff]  ;;  %v5697_v59 = vld [vmem:[#allocation29_spill] sm:$0xff] }
 0x208   : > { %2964 = vst [vmem:[%s5322_s6 + $0x40] sm:$0xff] %v2932_v9  ;;  %v2935_v16 = vmax.f32 %v2903_v51, 0.0  ;;  %v2901_v41 = vadd.f32 %v5306_v50, %v2862_v37  ;;  %v2867_v28 = vadd.f32 %v3742_v20, %v2655_v7  ;;  %v2653_v61 = vadd.f32 %v2562_v34, %v2425_v4  ;;  %v2777_v54 = vpop.f32.mrf.mxu0  ;;  %v5688_v37 = vld [vmem:[#allocation24_spill] sm:$0xff] }
 0x209   : > { %v3709_v55 = vpop.f32.mrf.mxu1  ;;  %v2435_v7 = vadd.f32 %v5688_v37, %v2229_v44  ;;  %v5700_v44 = vld [vmem:[#allocation31_spill] sm:$0xff] }
 0x20a   : > { %2967 = vst [vmem:[%s5322_s6 + $0x58] sm:$0xff] %v2935_v16  ;;  %v2933_v23 = vmax.f32 %v2901_v41, 0.0  ;;  %v2906_v27 = vadd.f32 %v5306_v50, %v2867_v28  ;;  %v2865_v22 = vadd.f32 %v2774_v1, %v2653_v61  ;;  %v2656_v6 = vadd.f32 %v3709_v55, %v2428_v21  ;;  %v3746_v60 = vpop.f32.mrf.mxu0  ;;  %v5690_v21 = vld [vmem:[#allocation30_spill] sm:$0xff] }
 0x20b   : > { %v2565_v43 = vpop.f32.mrf.mxu1  ;;  %v5692_v55 = vld [vmem:[#allocation22_spill] sm:$0xff] }
 0x20c   : > { %2965 = vst [vmem:[%s5322_s6 + $0x48] sm:$0xff] %v2933_v23  ;;  %v2938_v14 = vmax.f32 %v2906_v27, 0.0  ;;  %v2904_v62 = vadd.f32 %v5306_v50, %v2865_v22  ;;  %v2868_v63 = vadd.f32 %v3743_v47, %v2656_v6  ;;  %v2654_v40 = vadd.f32 %v2565_v43, %v2426_v2  ;;  %v2790_v12 = vpop.f32.mrf.mxu0  ;;  %v5689_v47 = vld [vmem:[#allocation18_spill] sm:$0xff]  ;;  %v5691_v2 = vld [vmem:[#allocation11_spill] sm:$0xff]  ;;  %v5693_v23 = vld [vmem:[#allocation32_spill] sm:$0xff] }
 0x20d   : > { %v3712_v13 = vpop.f32.mrf.mxu1  ;;  %v2230_v11 = vadd.f32 %v5690_v21, %v5689_v47  ;;  %v2433_v32 = vadd.f32 %v5691_v2, %v2227_v31  ;;  %v2228_v27 = vadd.f32 %v5693_v23, %v5692_v55  ;;  %v5703_v31 = vld [vmem:[#allocation33_spill] sm:$0xff] }
 0x20e   : > { %2970 = vst [vmem:[%s5322_s6 + $0x70] sm:$0xff] %v2938_v14  ;;  %v2936_v42 = vmax.f32 %v2904_v62, 0.0  ;;  %v2907_v38 = vadd.f32 %v5306_v50, %v2868_v63  ;;  %v2866_v26 = vadd.f32 %v2777_v54, %v2654_v40  ;;  %v2659_v17 = vadd.f32 %v3712_v13, %v2431_v3  ;;  %v3747_v39 = vpop.f32.mrf.mxu0  ;;  %v5695_v14 = vld [vmem:[#allocation27_spill] sm:$0xff]  ;;  %v5696_v62 = vld [vmem:[#allocation34_spill] sm:$0xff] }
 0x20f   : > { %v2578_v15 = vpop.f32.mrf.mxu1  ;;  %v2436_v43 = vadd.f32 %v5694_v48, %v2230_v11  ;;  %v2233_v63 = vadd.f32 %v5696_v62, %v5695_v14  ;;  %v2434_v13 = vadd.f32 %v5697_v59, %v2228_v27  ;;  %v5706_v11 = vld [vmem:[#allocation35_spill] sm:$0xff]  ;;  %v5709_v27 = vld [vmem:[#allocation37_spill] sm:$0xff] }
 0x210   : > { %2968 = vst [vmem:[%s5322_s6 + $0x60] sm:$0xff] %v2936_v42  ;;  %v2939_v19 = vmax.f32 %v2907_v38, 0.0  ;;  %v2905_v36 = vadd.f32 %v5306_v50, %v2866_v26  ;;  %v2871_v20 = vadd.f32 %v3746_v60, %v2659_v17  ;;  %v2657_v58 = vadd.f32 %v2578_v15, %v2429_v57  ;;  %v2793_v8 = vpop.f32.mrf.mxu0  ;;  %v5698_v42 = vld [vmem:[#allocation8_spill] sm:$0xff] }
 0x211   : > { %v3713_v1 = vpop.f32.mrf.mxu1  ;;  %v5699_v38 = vld [vmem:[#allocation36_spill] sm:$0xff]  ;;  %v2439_v15 = vadd.f32 %v5700_v44, %v2233_v63  ;;  %v5712_v63 = vld [vmem:[#allocation39_spill] sm:$0xff] }
 0x212   : > { %2971 = vst [vmem:[%s5322_s6 + $0x78] sm:$0xff] %v2939_v19  ;;  %v2937_v4 = vmax.f32 %v2905_v36, 0.0  ;;  %v2910_v53 = vadd.f32 %v5306_v50, %v2871_v20  ;;  %v2869_v18 = vadd.f32 %v2790_v12, %v2657_v58  ;;  %v2660_v9 = vadd.f32 %v3713_v1, %v2432_v46  ;;  %v3750_v51 = vpop.f32.mrf.mxu0  ;;  %v5701_v19 = vld [vmem:[#allocation13_spill] sm:$0xff]  ;;  %v5702_v36 = vld [vmem:[#allocation38_spill] sm:$0xff] }
 0x213   : > { %v2581_v34 = vpop.f32.mrf.mxu1  ;;  %v2231_v26 = vadd.f32 %v5699_v38, %v5698_v42  ;;  %v2234_v20 = vadd.f32 %v5702_v36, %v5701_v19  ;;  %v5714_v42 = vld [vmem:[#allocation41_spill] sm:$0xff] }
 0x214   : > { %2969 = vst [vmem:[%s5322_s6 + $0x68] sm:$0xff] %v2937_v4  ;;  %v2942_v16 = vmax.f32 %v2910_v53, 0.0  ;;  %v2908_v41 = vadd.f32 %v5306_v50, %v2869_v18  ;;  %v2872_v28 = vadd.f32 %v3747_v39, %v2660_v9  ;;  %v2658_v61 = vadd.f32 %v2581_v34, %v2430_v35  ;;  %v2806_v54 = vpop.f32.mrf.mxu0  ;;  %v5704_v4 = vld [vmem:[#allocation15_spill] sm:$0xff]  ;;  %v5705_v53 = vld [vmem:[#allocation40_spill] sm:$0xff] }
 0x215   : > { %v3716_v22 = vpop.f32.mrf.mxu1  ;;  %v2437_v1 = vadd.f32 %v5703_v31, %v2231_v26  ;;  %v2232_v18 = vadd.f32 %v5705_v53, %v5704_v4  ;;  %v2440_v34 = vadd.f32 %v5706_v11, %v2234_v20  ;;  %v5715_v26 = vld [vmem:[#allocation28_spill] sm:$0xff] }
 0x216   : > { %2974 = vst [vmem:[%s5322_s6 + $0x90] sm:$0xff] %v2942_v16  ;;  %v2940_v6 = vmax.f32 %v2908_v41, 0.0  ;;  %v2911_v60 = vadd.f32 %v5306_v50, %v2872_v28  ;;  %v2870_v3 = vadd.f32 %v2793_v8, %v2658_v61  ;;  %v2663_v24 = vadd.f32 %v3716_v22, %v2435_v7  ;;  %v3751_v49 = vpop.f32.mrf.mxu0  ;;  %v5707_v16 = vld [vmem:[#allocation17_spill] sm:$0xff]  ;;  %v5708_v41 = vld [vmem:[#allocation42_spill] sm:$0xff] }
 0x217   : > { %v2594_v40 = vpop.f32.mrf.mxu1  ;;  %v2237_v28 = vadd.f32 %v5708_v41, %v5707_v16  ;;  %v2438_v22 = vadd.f32 %v5709_v27, %v2232_v18 }
 0x218   : > { %2972 = vst [vmem:[%s5322_s6 + $0x80] sm:$0xff] %v2940_v6  ;;  %v2943_v12 = vmax.f32 %v2911_v60, 0.0  ;;  %v2909_v33 = vadd.f32 %v5306_v50, %v2870_v3  ;;  %v2875_v57 = vadd.f32 %v3750_v51, %v2663_v24  ;;  %v2661_v5 = vadd.f32 %v2594_v40, %v2433_v32  ;;  %v2809_v30 = vpop.f32.mrf.mxu0  ;;  %v5710_v6 = vld [vmem:[#allocation20_spill] sm:$0xff] }
 0x219   : > { %v3717_v17 = vpop.f32.mrf.mxu1  ;;  %v5711_v60 = vld [vmem:[#allocation44_spill] sm:$0xff]  ;;  %v2443_v40 = vadd.f32 %v5712_v63, %v2237_v28 }
 0x21a   : > { %2975 = vst [vmem:[%s5322_s6 + $0x98] sm:$0xff] %v2943_v12  ;;  %v2941_v39 = vmax.f32 %v2909_v33, 0.0  ;;  %v2914_v45 = vadd.f32 %v5306_v50, %v2875_v57  ;;  %v2873_v46 = vadd.f32 %v2806_v54, %v2661_v5  ;;  %v2664_v29 = vadd.f32 %v3717_v17, %v2436_v43  ;;  %v3754_v0 = vpop.f32.mrf.mxu0  ;;  %v5713_v12 = vld [vmem:[#allocation25_spill] sm:$0xff]  ;;  %v5716_v17 = vld [vmem:[#allocation46_spill] sm:$0xff] }
 0x21b   : > { %v2597_v58 = vpop.f32.mrf.mxu1  ;;  %v2235_v3 = vadd.f32 %v5711_v60, %v5710_v6  ;;  %v2238_v33 = vadd.f32 %v5290_v52, %v5713_v12 }
 0x21c   : > { %2973 = vst [vmem:[%s5322_s6 + $0x88] sm:$0xff] %v2941_v39  ;;  %v2946_v8 = vmax.f32 %v2914_v45, 0.0  ;;  %v2912_v10 = vadd.f32 %v5306_v50, %v2873_v46  ;;  %v2876_v35 = vadd.f32 %v3751_v49, %v2664_v29  ;;  %v2662_v56 = vadd.f32 %v2597_v58, %v2434_v13  ;;  %v2822_v25 = vpop.f32.mrf.mxu0 }
 0x21d   : > { %v3720_v9 = vpop.f32.mrf.mxu1  ;;  %v2441_v38 = vadd.f32 %v5714_v42, %v2235_v3  ;;  %v2236_v39 = vadd.f32 %v5716_v17, %v5715_v26 }
 0x21e   : > { %2978 = vst [vmem:[%s5322_s6 + $0xb0] sm:$0xff] %v2946_v8  ;;  %v2944_v51 = vmax.f32 %v2912_v10, 0.0  ;;  %v2915_v37 = vadd.f32 %v5306_v50, %v2876_v35  ;;  %v2874_v7 = vadd.f32 %v2809_v30, %v2662_v56  ;;  %v2667_v47 = vadd.f32 %v3720_v9, %v2439_v15  ;;  %v3755_v21 = vpop.f32.mrf.mxu0  ;;  %v5717_v15 = vld [vmem:[#allocation43_spill] sm:$0xff]  ;;  %v5718_v35 = vld [vmem:[#allocation45_spill] sm:$0xff] }
 0x21f   : > { %v2610_v61 = vpop.f32.mrf.mxu1  ;;  %v2444_v19 = vadd.f32 %v5717_v15, %v2238_v33  ;;  %v2442_v56 = vadd.f32 %v5718_v35, %v2236_v39 }
 0x220   : > { %2976 = vst [vmem:[%s5322_s6 + $0xa0] sm:$0xff] %v2944_v51  ;;  %v2947_v54 = vmax.f32 %v2915_v37, 0.0  ;;  %v2913_v2 = vadd.f32 %v5306_v50, %v2874_v7  ;;  %v2879_v32 = vadd.f32 %v3754_v0, %v2667_v47  ;;  %v2665_v55 = vadd.f32 %v2610_v61, %v2437_v1  ;;  %v2825_v23 = vpop.f32.mrf.mxu0 }
 0x221   : > { %v3721_v24 = vpop.f32.mrf.mxu1 }
 0x222   : > { %2979 = vst [vmem:[%s5322_s6 + $0xb8] sm:$0xff] %v2947_v54  ;;  %v2945_v49 = vmax.f32 %v2913_v2, 0.0  ;;  %v2918_v48 = vadd.f32 %v5306_v50, %v2879_v32  ;;  %v2877_v43 = vadd.f32 %v2822_v25, %v2665_v55  ;;  %v2668_v14 = vadd.f32 %v3721_v24, %v2440_v34  ;;  %v3758_v62 = vpop.f32.mrf.mxu0 }
 0x223   : > { %v2613_v57 = vpop.f32.mrf.mxu1 }
 0x224   : > { %2977 = vst [vmem:[%s5322_s6 + $0xa8] sm:$0xff] %v2945_v49  ;;  %v2950_v5 = vmax.f32 %v2918_v48, 0.0  ;;  %v2916_v30 = vadd.f32 %v5306_v50, %v2877_v43  ;;  %v2880_v59 = vadd.f32 %v3755_v21, %v2668_v14  ;;  %v2666_v13 = vadd.f32 %v2613_v57, %v2438_v22  ;;  %v2838_v46 = vpop.f32.mrf.mxu0 }
 0x225   : > { %v3724_v45 = vpop.f32.mrf.mxu1 }
 0x226   : > { %2982 = vst [vmem:[%s5322_s6 + $0xd0] sm:$0xff] %v2950_v5  ;;  %v2948_v29 = vmax.f32 %v2916_v30, 0.0  ;;  %v2919_v52 = vadd.f32 %v5306_v50, %v2880_v59  ;;  %v2878_v0 = vadd.f32 %v2825_v23, %v2666_v13  ;;  %v2671_v44 = vadd.f32 %v3724_v45, %v2443_v40  ;;  %v3759_v31 = vpop.f32.mrf.mxu0 }
 0x227   : > { %v2626_v36 = vpop.f32.mrf.mxu1 }
 0x228   : > { %2980 = vst [vmem:[%s5322_s6 + $0xc0] sm:$0xff] %v2948_v29  ;;  %v2951_v20 = vmax.f32 %v2919_v52, 0.0  ;;  %v2917_v58 = vadd.f32 %v5306_v50, %v2878_v0  ;;  %v2883_v8 = vadd.f32 %v3758_v62, %v2671_v44  ;;  %v2669_v10 = vadd.f32 %v2626_v36, %v2441_v38  ;;  %v2841_v21 = vpop.f32.mrf.mxu0 }
 0x229   : > { %v3725_v25 = vpop.f32.mrf.mxu1 }
 0x22a   : > { %2983 = vst [vmem:[%s5322_s6 + $0xd8] sm:$0xff] %v2951_v20  ;;  %v2949_v1 = vmax.f32 %v2917_v58, 0.0  ;;  %v2922_v4 = vadd.f32 %v5306_v50, %v2883_v8  ;;  %v2881_v53 = vadd.f32 %v2838_v46, %v2669_v10  ;;  %v2672_v18 = vadd.f32 %v3725_v25, %v2444_v19 }
 0x22b   : > { %v2629_v9 = vpop.f32.mrf.mxu1 }
 0x22c   : > { %2981 = vst [vmem:[%s5322_s6 + $0xc8] sm:$0xff] %v2949_v1  ;;  %v2954_v51 = vmax.f32 %v2922_v4, 0.0  ;;  %v2920_v37 = vadd.f32 %v5306_v50, %v2881_v53  ;;  %v2884_v7 = vadd.f32 %v3759_v31, %v2672_v18  ;;  %v2670_v47 = vadd.f32 %v2629_v9, %v2442_v56 }
 0x22e   : > { %2986 = vst [vmem:[%s5322_s6 + $0xf0] sm:$0xff] %v2954_v51  ;;  %v2952_v11 = vmax.f32 %v2920_v37, 0.0  ;;  %v2923_v34 = vadd.f32 %v5306_v50, %v2884_v7  ;;  %v2882_v16 = vadd.f32 %v2841_v21, %v2670_v47 }
 0x230   : > { %2984 = vst [vmem:[%s5322_s6 + $0xe0] sm:$0xff] %v2952_v11  ;;  %v2955_v41 = vmax.f32 %v2923_v34, 0.0  ;;  %v2921_v28 = vadd.f32 %v5306_v50, %v2882_v16 }
 0x232   : > { %2987 = vst [vmem:[%s5322_s6 + $0xf8] sm:$0xff] %v2955_v41  ;;  %v2953_v61 = vmax.f32 %v2921_v28, 0.0 }
 0x234   : > { %2985 = vst [vmem:[%s5322_s6 + $0xe8] sm:$0xff] %v2953_v61 }
 0x235   : > { %3845 = shalt.err (!%p3842_p3)
}
 0x236   : > { %s3846_s25 = scalar_lea.hbm %s5463_s11, 4096  ;;  %s3850_s28 = scalar_lea.hbm %s5514_s3, 8192 }
 0x237   : > { %p3847_p4 = scmp.ne.s32.totalorder %s5463_s11, %s3846_s25  ;;  %p3851_p9 = scmp.lt.s32.totalorder %s5463_s11, %s5514_s3 }
 0x238   : > { %p3852_p10 = scmp.lt.s32.totalorder %s3850_s28, %s3846_s25 }
 0x239   : > { %p3848_p7 = pnand %p3847_p4, %p3955_p5 }
 0x23a   : > { %p3853_p11 = por %p3852_p10, %p3851_p9 }
 0x23b   : > { %p3849_p8 = pneg %p3848_p7 }
 0x23d   : > { %p3854_p12 = pnand %p3853_p11, %p3849_p8 }
 0x23f   : > { %3857 = shalt.err (!%p3854_p12)
}
 0x240   : > { %s3895_s4 = smov 128   ;;  %s3896_s5 = smov 8  }
 0x241   : > { %3773 = dma.vmem_to_hbm [thread:$0]  (%p3955_p5), %s5465_s8, 4096, %s5463_s11, %s5471_s16, %s3895_s4, %s3895_s4, %s3896_s5  }
 0x242 PF: > { %p3779_p13 = scmp.ge.s32.totalorder %s3892_s15, 2  ;;  %s3017_s6 = sand.u32 1, %s3880_s12  }
 0x243   : > { %s3018_s7 = scalar_lea.sflag [#allocation3], %s3017_s6 }
 0x244   : > { %p3776_p0 = pnand %p3779_p13, %p3959_p6 }
 0x246   : > { %p3777_p1 = pneg %p3776_p0 }
 0x248   : > { %3875 = dma.done.wait (%p3777_p1), %s3018_s7, 4096  }
 0x249   : > { %3877 = vsyncadd (%p3777_p1), %s3018_s7, 4294963200  ;;  %p13_p2 = scmp.ge.s32.totalorder %s3942_s18, 4   ;;  %s5719_s12 = smov %s3884_s13 }
 0x24a   : > { %s5720_s13 = smov %s3888_s14  ;;  %s5721_s14 = smov %s3953_s21 }
 0x24b   : > { %s5722_s15 = smov %s3942_s18  ;;  %15 = sbr.rel (!%p13_p2) target bundleno = 3 (0x3), region = 75 }
 0x250   :  { %3023 = vsyncpa [#allocation3], 1 }
 0x251   :  { %3025 = vsyncpa [#allocation3 + $0x1], 1 }

</bundles_post_ra>
